<compile_context>
chip_gen: v7x
topology: tpu7x:2x2x1
jax: 0.10.0
libtpu: 0.0.40
codegen_flags: <defaults>
</compile_context>

<pallas_src>
import jax
import jax.numpy as jnp
from jax.experimental import pallas as pl
from jax.experimental.pallas import tpu as pltpu  # noqa: F401  (not needed at this size)

# ----------------------- module hyper-parameters (kwargs) -----------------------
FLOW_IN_CHANNELS = 16        # flow_in_channels
FLOW_MID_CHANNELS = 32       # flow_mid_channels (coupling MLP hidden dim)
FLOW_HIDDEN_DEPTH = 1        # flow_hidden_depth
N_FLOWS = 4                  # n_flows
CONTROL = True               # control
COND_SIZE = 10 if CONTROL else 0
EMBED_CHANNELS = 16          # flow_embedding_channels (defaults to in_channels)
EMBED_DIM = EMBED_CHANNELS + COND_SIZE * 3   # embedding dim fed to the flow
HALF = FLOW_IN_CHANNELS // 2
COND_IN = HALF + EMBED_DIM                   # coupling MLP input dim (reference layout)
LEAKY_SLOPE = 0.01
N_COUPLE = 2 * N_FLOWS                       # total couplings
H2 = 2 * FLOW_MID_CHANNELS                   # packed (s|t) hidden width

IMG_C, IMG_H, IMG_W = 3, 16, 16              # cond[0] image (NCHW)


# ------------------------------ fused kernel ------------------------------------
def fused_forward_kernel(x_ref, img_ref, pos_ref,
                         enc_w_ref, enc_b_ref,
                         an_ref, actld_ref,
                         we_ref, be_ref,
                         wx_ref, wh_ref, bh_ref, wo_ref, bo_ref,
                         out_ref, logdet_ref):
    B = x_ref.shape[0]

    # ---- embedder (synthetic linear encoder, .mode() == mean) ----
    emb_enc = (jnp.dot(img_ref[...], enc_w_ref[...],
                       preferred_element_type=jnp.float32) + enc_b_ref[...])    # (B, 16)

    # ---- embed_pos: one-hot of (pos * cond_size - 1e-4).long() ----
    idx = (pos_ref[...] * COND_SIZE - 0.0001).astype(jnp.int32)                 # (B, 3)
    lanes = jax.lax.broadcasted_iota(jnp.int32, (B, COND_SIZE), 1)              # (B, 10)
    ohs = [jnp.where(lanes == idx[:, j:j + 1], 1.0, 0.0) for j in range(3)]
    emb = jnp.concatenate([emb_enc] + ohs, axis=1)                              # (B, EMBED_DIM)

    # ---- embedding contribution to every coupling's first layer, one matmul ----
    # we_ref: (EMBED_DIM, N_COUPLE*H2); be_ref: (1, N_COUPLE*H2) (input bias folded in)
    emb_proj = (jnp.dot(emb, we_ref[...],
                        preferred_element_type=jnp.float32) + be_ref[...])      # (B, 8*2H)

    # ---- conditional flow, fully unrolled; halves kept as separate values so the
    #      coupling swap / flow permutation are renames (no lane shuffles) ----
    x = x_ref[...]
    a = x[:, :HALF]
    b = x[:, HALF:]
    logdet = jnp.zeros((B, 1), jnp.float32) + actld_ref[...]   # ActNorm logdet (constant)

    for f in range(N_FLOWS):
        # ActNorm on the current ordering: y = (x + loc) * scale
        a = (a + an_ref[f, 0]) * an_ref[f, 2]
        b = (b + an_ref[f, 1]) * an_ref[f, 3]
        for i in range(2):
            c = 2 * f + i
            # fused (s|t) subnet, first layer = xa part + precomputed embedding part
            h = jnp.dot(a, wx_ref[c], preferred_element_type=jnp.float32)
            h = h + emb_proj[:, c * H2:(c + 1) * H2]
            h = jnp.where(h > 0, h, LEAKY_SLOPE * h)
            for d in range(FLOW_HIDDEN_DEPTH):
                hd = c * FLOW_HIDDEN_DEPTH + d
                h = jnp.dot(h, wh_ref[hd], preferred_element_type=jnp.float32) + bh_ref[hd]
                h = jnp.where(h > 0, h, LEAKY_SLOPE * h)
            st = jnp.dot(h, wo_ref[c], preferred_element_type=jnp.float32) + bo_ref[c]
            s = jnp.tanh(st[:, :HALF])
            t = st[:, HALF:]
            b = b * jnp.exp(s) + t
            logdet = logdet + jnp.sum(s, axis=1, keepdims=True)
            # half swap: i==0 -> feeds the second coupling; i==1 -> end-of-flow permutation
            a, b = b, a

    out_ref[...] = jnp.concatenate([a, b], axis=1)
    logdet_ref[...] = logdet


# ------------------------------ wrapper ------------------------------------------
@jax.jit
def supervised_transformer_forward(packed, x, cond_img, pos):
    B = x.shape[0]
    img_flat = cond_img.reshape(B, IMG_C * IMG_H * IMG_W)   # NCHW flatten (host-side, free)
    out, logdet = pl.pallas_call(
        fused_forward_kernel,
        out_shape=(jax.ShapeDtypeStruct((B, FLOW_IN_CHANNELS), jnp.float32),
                   jax.ShapeDtypeStruct((B, 1), jnp.float32)),
    )(x, img_flat, pos,
      packed["enc_w"], packed["enc_b"],
      packed["an"], packed["actld"],
      packed["w_emb"], packed["b_emb"],
      packed["w_x"], packed["w_hid"], packed["b_hid"],
      packed["w_out"], packed["b_out"])
    return out, logdet[:, 0]


# ------------------------------ parameters ---------------------------------------
def init_params(key):
    """Reference (unpacked) parameterization, identical to the original implementation."""
    ks = jax.random.split(key, 10)
    Hh, D = FLOW_MID_CHANNELS, FLOW_HIDDEN_DEPTH
    return {
        "enc_w": 0.02 * jax.random.normal(ks[0], (IMG_C * IMG_H * IMG_W, EMBED_CHANNELS), jnp.float32),
        "enc_b": 0.01 * jax.random.normal(ks[1], (1, EMBED_CHANNELS), jnp.float32),
        "loc":   0.10 * jax.random.normal(ks[2], (N_FLOWS, 1, FLOW_IN_CHANNELS), jnp.float32),
        "scale": 1.0 + 0.10 * jax.random.normal(ks[3], (N_FLOWS, 1, FLOW_IN_CHANNELS), jnp.float32),
        # 4 subnets per flow: [s0, t0, s1, t1]
        "w_in":  0.05 * jax.random.normal(ks[4], (N_FLOWS, 4, COND_IN, Hh), jnp.float32),
        "b_in":  0.01 * jax.random.normal(ks[5], (N_FLOWS, 4, 1, Hh), jnp.float32),
        "w_hid": 0.05 * jax.random.normal(ks[6], (N_FLOWS, 4, D, Hh, Hh), jnp.float32),
        "b_hid": 0.01 * jax.random.normal(ks[7], (N_FLOWS, 4, D, 1, Hh), jnp.float32),
        "w_out": 0.05 * jax.random.normal(ks[8], (N_FLOWS, 4, Hh, HALF), jnp.float32),
        "b_out": 0.01 * jax.random.normal(ks[9], (N_FLOWS, 4, 1, HALF), jnp.float32),
    }


def pack_params(p):
    """Host-side repack: fuse s/t subnets (block-diagonal), split first layer into
    xa-part and embedding-part, flatten biases, precompute the ActNorm logdet constant."""
    Hh, D = FLOW_MID_CHANNELS, FLOW_HIDDEN_DEPTH
    w_x, w_e_cols, b_e_cols = [], [], []
    w_hid_l, b_hid_l, w_out_l, b_out_l = [], [], [], []
    for f in range(N_FLOWS):
        for i in range(2):
            js, jt = 2 * i, 2 * i + 1            # s-net, t-net
            # first layer rows [:HALF] see xa, rows [HALF:] see the embedding
            w_x.append(jnp.concatenate([p["w_in"][f, js, :HALF], p["w_in"][f, jt, :HALF]], axis=-1))
            w_e_cols.append(jnp.concatenate([p["w_in"][f, js, HALF:], p["w_in"][f, jt, HALF:]], axis=-1))
            b_e_cols.append(jnp.concatenate([p["b_in"][f, js, 0], p["b_in"][f, jt, 0]], axis=-1))
            for d in range(D):
                blk = jnp.zeros((H2, H2), jnp.float32)
                blk = blk.at[:Hh, :Hh].set(p["w_hid"][f, js, d])
                blk = blk.at[Hh:, Hh:].set(p["w_hid"][f, jt, d])
                w_hid_l.append(blk)
                b_hid_l.append(jnp.concatenate([p["b_hid"][f, js, d, 0], p["b_hid"][f, jt, d, 0]], axis=-1))
            ob = jnp.zeros((H2, 2 * HALF), jnp.float32)
            ob = ob.at[:Hh, :HALF].set(p["w_out"][f, js])
            ob = ob.at[Hh:, HALF:].set(p["w_out"][f, jt])
            w_out_l.append(ob)
            b_out_l.append(jnp.concatenate([p["b_out"][f, js, 0], p["b_out"][f, jt, 0]], axis=-1))

    an = jnp.stack([
        jnp.stack([p["loc"][f, 0, :HALF], p["loc"][f, 0, HALF:],
                   p["scale"][f, 0, :HALF], p["scale"][f, 0, HALF:]], axis=0)
        for f in range(N_FLOWS)], axis=0)[:, :, None, :]            # (N_FLOWS, 4, 1, HALF)
    actld = jnp.sum(jnp.log(jnp.abs(p["scale"]))).reshape(1, 1)     # total ActNorm logdet

    return {
        "enc_w": p["enc_w"], "enc_b": p["enc_b"],
        "an": an, "actld": actld,
        "w_emb": jnp.concatenate(w_e_cols, axis=-1),                # (EMBED_DIM, 8*2H)
        "b_emb": jnp.concatenate(b_e_cols, axis=-1)[None, :],       # (1, 8*2H)
        "w_x": jnp.stack(w_x, axis=0),                              # (8, HALF, 2H)
        "w_hid": jnp.stack(w_hid_l, axis=0),                        # (8*D, 2H, 2H)
        "b_hid": jnp.stack(b_hid_l, axis=0)[:, None, :],            # (8*D, 1, 2H)
        "w_out": jnp.stack(w_out_l, axis=0),                        # (8, 2H, 2*HALF)
        "b_out": jnp.stack(b_out_l, axis=0)[:, None, :],            # (8, 1, 2*HALF)
    }


if __name__ == "__main__":
    key = jax.random.PRNGKey(0)
    pkey, xkey, ckey, poskey = jax.random.split(key, 4)

    params = pack_params(init_params(pkey))

    B = 2
    x = jax.random.normal(xkey, (B, FLOW_IN_CHANNELS), jnp.float32)            # flow input
    cond_img = jax.random.normal(ckey, (B, IMG_C, IMG_H, IMG_W), jnp.float32)  # cond[0], NCHW
    pos = jax.random.uniform(poskey, (B, 3), jnp.float32, 0.0, 1.0)            # cond[1]

    out, logdet = supervised_transformer_forward(params, x, cond_img, pos)
    jax.block_until_ready((out, logdet))

    assert out.shape == (B, FLOW_IN_CHANNELS)
    assert logdet.shape == (B,)
    print("KERNEL_OK")
</pallas_src>

<mosaic_0001>
module attributes {stable_mosaic.version = 11 : i64} {
  func.func @fused_forward_kernel(%arg0: memref<2x16xf32, #tpu.memory_space<vmem>>, %arg1: memref<2x768xf32, #tpu.memory_space<vmem>>, %arg2: memref<2x3xf32, #tpu.memory_space<vmem>>, %arg3: memref<768x16xf32, #tpu.memory_space<vmem>>, %arg4: memref<1x16xf32, #tpu.memory_space<vmem>>, %arg5: memref<4x4x1x8xf32, #tpu.memory_space<vmem>>, %arg6: memref<1x1xf32, #tpu.memory_space<vmem>>, %arg7: memref<46x512xf32, #tpu.memory_space<vmem>>, %arg8: memref<1x512xf32, #tpu.memory_space<vmem>>, %arg9: memref<8x8x64xf32, #tpu.memory_space<vmem>>, %arg10: memref<8x64x64xf32, #tpu.memory_space<vmem>>, %arg11: memref<8x1x64xf32, #tpu.memory_space<vmem>>, %arg12: memref<8x64x16xf32, #tpu.memory_space<vmem>>, %arg13: memref<8x1x16xf32, #tpu.memory_space<vmem>>, %arg14: memref<2x16xf32, #tpu.memory_space<vmem>>, %arg15: memref<2x1xf32, #tpu.memory_space<vmem>>) attributes {dimension_semantics = [], scalar_prefetch = 0 : i64, scratch_operands = 0 : i64, tpu.core_type = #tpu.core_type<tc>} {
    %c0 = arith.constant 0 : index
    %c0_0 = arith.constant 0 : index
    %0 = vector.load %arg1[%c0, %c0_0] : memref<2x768xf32, #tpu.memory_space<vmem>>, vector<2x768xf32>
    %c0_1 = arith.constant 0 : index
    %c0_2 = arith.constant 0 : index
    %1 = vector.load %arg3[%c0_1, %c0_2] : memref<768x16xf32, #tpu.memory_space<vmem>>, vector<768x16xf32>
    %cst = arith.constant dense<0.000000e+00> : vector<2x16xf32>
    %2 = tpu.matmul %0, %1, %cst {dimension_numbers = #tpu.dot_dimension_numbers<[1], [0], [0], [1], [0, 0, 1, 1], [], []>} : vector<2x768xf32>, vector<768x16xf32>, vector<2x16xf32> -> vector<2x16xf32>
    %c0_3 = arith.constant 0 : index
    %c0_4 = arith.constant 0 : index
    %3 = vector.load %arg4[%c0_3, %c0_4] : memref<1x16xf32, #tpu.memory_space<vmem>>, vector<1x16xf32>
    %4 = vector.broadcast %3 : vector<1x16xf32> to vector<2x16xf32>
    %5 = arith.addf %2, %4 : vector<2x16xf32>
    %c0_5 = arith.constant 0 : index
    %c0_6 = arith.constant 0 : index
    %6 = vector.load %arg2[%c0_5, %c0_6] : memref<2x3xf32, #tpu.memory_space<vmem>>, vector<2x3xf32>
    %cst_7 = arith.constant 1.000000e+01 : f32
    %7 = vector.broadcast %cst_7 : f32 to vector<2x3xf32>
    %8 = arith.mulf %6, %7 : vector<2x3xf32>
    %cst_8 = arith.constant 9.99999974E-5 : f32
    %9 = vector.broadcast %cst_8 : f32 to vector<2x3xf32>
    %10 = arith.subf %8, %9 : vector<2x3xf32>
    %11 = arith.fptosi %10 : vector<2x3xf32> to vector<2x3xi32>
    %12 = tpu.iota {dimensions = array<i32: 1>} : vector<2x10xi32>
    %13 = vector.extract_strided_slice %11 {offsets = [0, 0], sizes = [2, 1], strides = [1, 1]} : vector<2x3xi32> to vector<2x1xi32>
    %14 = vector.broadcast %13 : vector<2x1xi32> to vector<2x10xi32>
    %15 = arith.cmpi eq, %12, %14 : vector<2x10xi32>
    %cst_9 = arith.constant 1.000000e+00 : f32
    %cst_10 = arith.constant 0.000000e+00 : f32
    %16 = vector.broadcast %cst_9 : f32 to vector<2x10xf32>
    %17 = vector.broadcast %cst_10 : f32 to vector<2x10xf32>
    %18 = arith.select %15, %16, %17 : vector<2x10xi1>, vector<2x10xf32>
    %19 = vector.extract_strided_slice %11 {offsets = [0, 1], sizes = [2, 1], strides = [1, 1]} : vector<2x3xi32> to vector<2x1xi32>
    %20 = vector.broadcast %19 : vector<2x1xi32> to vector<2x10xi32>
    %21 = arith.cmpi eq, %12, %20 : vector<2x10xi32>
    %cst_11 = arith.constant 1.000000e+00 : f32
    %cst_12 = arith.constant 0.000000e+00 : f32
    %22 = vector.broadcast %cst_11 : f32 to vector<2x10xf32>
    %23 = vector.broadcast %cst_12 : f32 to vector<2x10xf32>
    %24 = arith.select %21, %22, %23 : vector<2x10xi1>, vector<2x10xf32>
    %25 = vector.extract_strided_slice %11 {offsets = [0, 2], sizes = [2, 1], strides = [1, 1]} : vector<2x3xi32> to vector<2x1xi32>
    %26 = vector.broadcast %25 : vector<2x1xi32> to vector<2x10xi32>
    %27 = arith.cmpi eq, %12, %26 : vector<2x10xi32>
    %cst_13 = arith.constant 1.000000e+00 : f32
    %cst_14 = arith.constant 0.000000e+00 : f32
    %28 = vector.broadcast %cst_13 : f32 to vector<2x10xf32>
    %29 = vector.broadcast %cst_14 : f32 to vector<2x10xf32>
    %30 = arith.select %27, %28, %29 : vector<2x10xi1>, vector<2x10xf32>
    %31 = tpu.concatenate %5, %18, %24, %30 in 1 : vector<2x16xf32>, vector<2x10xf32>, vector<2x10xf32>, vector<2x10xf32> -> vector<2x46xf32>
    %c0_15 = arith.constant 0 : index
    %c0_16 = arith.constant 0 : index
    %32 = vector.load %arg7[%c0_15, %c0_16] : memref<46x512xf32, #tpu.memory_space<vmem>>, vector<46x512xf32>
    %cst_17 = arith.constant dense<0.000000e+00> : vector<2x512xf32>
    %33 = tpu.matmul %31, %32, %cst_17 {dimension_numbers = #tpu.dot_dimension_numbers<[1], [0], [0], [1], [0, 0, 1, 1], [], []>} : vector<2x46xf32>, vector<46x512xf32>, vector<2x512xf32> -> vector<2x512xf32>
    %c0_18 = arith.constant 0 : index
    %c0_19 = arith.constant 0 : index
    %34 = vector.load %arg8[%c0_18, %c0_19] : memref<1x512xf32, #tpu.memory_space<vmem>>, vector<1x512xf32>
    %35 = vector.broadcast %34 : vector<1x512xf32> to vector<2x512xf32>
    %36 = arith.addf %33, %35 : vector<2x512xf32>
    %c0_20 = arith.constant 0 : index
    %c0_21 = arith.constant 0 : index
    %37 = vector.load %arg0[%c0_20, %c0_21] : memref<2x16xf32, #tpu.memory_space<vmem>>, vector<2x16xf32>
    %38 = vector.extract_strided_slice %37 {offsets = [0, 0], sizes = [2, 8], strides = [1, 1]} : vector<2x16xf32> to vector<2x8xf32>
    %39 = vector.extract_strided_slice %37 {offsets = [0, 8], sizes = [2, 8], strides = [1, 1]} : vector<2x16xf32> to vector<2x8xf32>
    %cst_22 = arith.constant 0.000000e+00 : f32
    %40 = vector.broadcast %cst_22 : f32 to vector<2x1xf32>
    %c0_23 = arith.constant 0 : index
    %c0_24 = arith.constant 0 : index
    %41 = vector.load %arg6[%c0_23, %c0_24] : memref<1x1xf32, #tpu.memory_space<vmem>>, vector<1x1xf32>
    %42 = vector.broadcast %41 : vector<1x1xf32> to vector<2x1xf32>
    %43 = arith.addf %40, %42 : vector<2x1xf32>
    %c0_25 = arith.constant 0 : index
    %c0_26 = arith.constant 0 : index
    %c0_27 = arith.constant 0 : index
    %c0_28 = arith.constant 0 : index
    %44 = vector.load %arg5[%c0_25, %c0_26, %c0_27, %c0_28] : memref<4x4x1x8xf32, #tpu.memory_space<vmem>>, vector<1x1x1x8xf32>
    %45 = vector.shape_cast %44 : vector<1x1x1x8xf32> to vector<1x8xf32>
    %46 = vector.broadcast %45 : vector<1x8xf32> to vector<2x8xf32>
    %47 = arith.addf %38, %46 : vector<2x8xf32>
    %c0_29 = arith.constant 0 : index
    %c2 = arith.constant 2 : index
    %c0_30 = arith.constant 0 : index
    %c0_31 = arith.constant 0 : index
    %48 = vector.load %arg5[%c0_29, %c2, %c0_30, %c0_31] : memref<4x4x1x8xf32, #tpu.memory_space<vmem>>, vector<1x1x1x8xf32>
    %49 = vector.shape_cast %48 : vector<1x1x1x8xf32> to vector<1x8xf32>
    %50 = vector.broadcast %49 : vector<1x8xf32> to vector<2x8xf32>
    %51 = arith.mulf %47, %50 : vector<2x8xf32>
    %c0_32 = arith.constant 0 : index
    %c1 = arith.constant 1 : index
    %c0_33 = arith.constant 0 : index
    %c0_34 = arith.constant 0 : index
    %52 = vector.load %arg5[%c0_32, %c1, %c0_33, %c0_34] : memref<4x4x1x8xf32, #tpu.memory_space<vmem>>, vector<1x1x1x8xf32>
    %53 = vector.shape_cast %52 : vector<1x1x1x8xf32> to vector<1x8xf32>
    %54 = vector.broadcast %53 : vector<1x8xf32> to vector<2x8xf32>
    %55 = arith.addf %39, %54 : vector<2x8xf32>
    %c0_35 = arith.constant 0 : index
    %c3 = arith.constant 3 : index
    %c0_36 = arith.constant 0 : index
    %c0_37 = arith.constant 0 : index
    %56 = vector.load %arg5[%c0_35, %c3, %c0_36, %c0_37] : memref<4x4x1x8xf32, #tpu.memory_space<vmem>>, vector<1x1x1x8xf32>
    %57 = vector.shape_cast %56 : vector<1x1x1x8xf32> to vector<1x8xf32>
    %58 = vector.broadcast %57 : vector<1x8xf32> to vector<2x8xf32>
    %59 = arith.mulf %55, %58 : vector<2x8xf32>
    %c0_38 = arith.constant 0 : index
    %c0_39 = arith.constant 0 : index
    %c0_40 = arith.constant 0 : index
    %60 = vector.load %arg9[%c0_38, %c0_39, %c0_40] : memref<8x8x64xf32, #tpu.memory_space<vmem>>, vector<1x8x64xf32>
    %61 = vector.shape_cast %60 : vector<1x8x64xf32> to vector<8x64xf32>
    %cst_41 = arith.constant dense<0.000000e+00> : vector<2x64xf32>
    %62 = tpu.matmul %51, %61, %cst_41 {dimension_numbers = #tpu.dot_dimension_numbers<[1], [0], [0], [1], [0, 0, 1, 1], [], []>} : vector<2x8xf32>, vector<8x64xf32>, vector<2x64xf32> -> vector<2x64xf32>
    %63 = vector.extract_strided_slice %36 {offsets = [0, 0], sizes = [2, 64], strides = [1, 1]} : vector<2x512xf32> to vector<2x64xf32>
    %64 = arith.addf %62, %63 : vector<2x64xf32>
    %cst_42 = arith.constant 0.000000e+00 : f32
    %65 = vector.broadcast %cst_42 : f32 to vector<2x64xf32>
    %66 = arith.cmpf ogt, %64, %65 : vector<2x64xf32>
    %cst_43 = arith.constant 0.00999999977 : f32
    %67 = vector.broadcast %cst_43 : f32 to vector<2x64xf32>
    %68 = arith.mulf %67, %64 : vector<2x64xf32>
    %69 = arith.select %66, %64, %68 : vector<2x64xi1>, vector<2x64xf32>
    %c0_44 = arith.constant 0 : index
    %c0_45 = arith.constant 0 : index
    %c0_46 = arith.constant 0 : index
    %70 = vector.load %arg10[%c0_44, %c0_45, %c0_46] : memref<8x64x64xf32, #tpu.memory_space<vmem>>, vector<1x64x64xf32>
    %71 = vector.shape_cast %70 : vector<1x64x64xf32> to vector<64x64xf32>
    %cst_47 = arith.constant dense<0.000000e+00> : vector<2x64xf32>
    %72 = tpu.matmul %69, %71, %cst_47 {dimension_numbers = #tpu.dot_dimension_numbers<[1], [0], [0], [1], [0, 0, 1, 1], [], []>} : vector<2x64xf32>, vector<64x64xf32>, vector<2x64xf32> -> vector<2x64xf32>
    %c0_48 = arith.constant 0 : index
    %c0_49 = arith.constant 0 : index
    %c0_50 = arith.constant 0 : index
    %73 = vector.load %arg11[%c0_48, %c0_49, %c0_50] : memref<8x1x64xf32, #tpu.memory_space<vmem>>, vector<1x1x64xf32>
    %74 = vector.shape_cast %73 : vector<1x1x64xf32> to vector<1x64xf32>
    %75 = vector.broadcast %74 : vector<1x64xf32> to vector<2x64xf32>
    %76 = arith.addf %72, %75 : vector<2x64xf32>
    %cst_51 = arith.constant 0.000000e+00 : f32
    %77 = vector.broadcast %cst_51 : f32 to vector<2x64xf32>
    %78 = arith.cmpf ogt, %76, %77 : vector<2x64xf32>
    %cst_52 = arith.constant 0.00999999977 : f32
    %79 = vector.broadcast %cst_52 : f32 to vector<2x64xf32>
    %80 = arith.mulf %79, %76 : vector<2x64xf32>
    %81 = arith.select %78, %76, %80 : vector<2x64xi1>, vector<2x64xf32>
    %c0_53 = arith.constant 0 : index
    %c0_54 = arith.constant 0 : index
    %c0_55 = arith.constant 0 : index
    %82 = vector.load %arg12[%c0_53, %c0_54, %c0_55] : memref<8x64x16xf32, #tpu.memory_space<vmem>>, vector<1x64x16xf32>
    %83 = vector.shape_cast %82 : vector<1x64x16xf32> to vector<64x16xf32>
    %cst_56 = arith.constant dense<0.000000e+00> : vector<2x16xf32>
    %84 = tpu.matmul %81, %83, %cst_56 {dimension_numbers = #tpu.dot_dimension_numbers<[1], [0], [0], [1], [0, 0, 1, 1], [], []>} : vector<2x64xf32>, vector<64x16xf32>, vector<2x16xf32> -> vector<2x16xf32>
    %c0_57 = arith.constant 0 : index
    %c0_58 = arith.constant 0 : index
    %c0_59 = arith.constant 0 : index
    %85 = vector.load %arg13[%c0_57, %c0_58, %c0_59] : memref<8x1x16xf32, #tpu.memory_space<vmem>>, vector<1x1x16xf32>
    %86 = vector.shape_cast %85 : vector<1x1x16xf32> to vector<1x16xf32>
    %87 = vector.broadcast %86 : vector<1x16xf32> to vector<2x16xf32>
    %88 = arith.addf %84, %87 : vector<2x16xf32>
    %89 = vector.extract_strided_slice %88 {offsets = [0, 0], sizes = [2, 8], strides = [1, 1]} : vector<2x16xf32> to vector<2x8xf32>
    %90 = math.tanh %89 : vector<2x8xf32>
    %91 = vector.extract_strided_slice %88 {offsets = [0, 8], sizes = [2, 8], strides = [1, 1]} : vector<2x16xf32> to vector<2x8xf32>
    %92 = math.exp %90 : vector<2x8xf32>
    %93 = arith.mulf %59, %92 : vector<2x8xf32>
    %94 = arith.addf %93, %91 : vector<2x8xf32>
    %cst_60 = arith.constant dense<0.000000e+00> : vector<2xf32>
    %95 = vector.multi_reduction <add>, %90, %cst_60 [1] : vector<2x8xf32> to vector<2xf32>
    %96 = vector.shape_cast %95 : vector<2xf32> to vector<2x1xf32>
    %97 = arith.addf %43, %96 : vector<2x1xf32>
    %c1_61 = arith.constant 1 : index
    %c0_62 = arith.constant 0 : index
    %c0_63 = arith.constant 0 : index
    %98 = vector.load %arg9[%c1_61, %c0_62, %c0_63] : memref<8x8x64xf32, #tpu.memory_space<vmem>>, vector<1x8x64xf32>
    %99 = vector.shape_cast %98 : vector<1x8x64xf32> to vector<8x64xf32>
    %cst_64 = arith.constant dense<0.000000e+00> : vector<2x64xf32>
    %100 = tpu.matmul %94, %99, %cst_64 {dimension_numbers = #tpu.dot_dimension_numbers<[1], [0], [0], [1], [0, 0, 1, 1], [], []>} : vector<2x8xf32>, vector<8x64xf32>, vector<2x64xf32> -> vector<2x64xf32>
    %101 = vector.extract_strided_slice %36 {offsets = [0, 64], sizes = [2, 64], strides = [1, 1]} : vector<2x512xf32> to vector<2x64xf32>
    %102 = arith.addf %100, %101 : vector<2x64xf32>
    %cst_65 = arith.constant 0.000000e+00 : f32
    %103 = vector.broadcast %cst_65 : f32 to vector<2x64xf32>
    %104 = arith.cmpf ogt, %102, %103 : vector<2x64xf32>
    %cst_66 = arith.constant 0.00999999977 : f32
    %105 = vector.broadcast %cst_66 : f32 to vector<2x64xf32>
    %106 = arith.mulf %105, %102 : vector<2x64xf32>
    %107 = arith.select %104, %102, %106 : vector<2x64xi1>, vector<2x64xf32>
    %c1_67 = arith.constant 1 : index
    %c0_68 = arith.constant 0 : index
    %c0_69 = arith.constant 0 : index
    %108 = vector.load %arg10[%c1_67, %c0_68, %c0_69] : memref<8x64x64xf32, #tpu.memory_space<vmem>>, vector<1x64x64xf32>
    %109 = vector.shape_cast %108 : vector<1x64x64xf32> to vector<64x64xf32>
    %cst_70 = arith.constant dense<0.000000e+00> : vector<2x64xf32>
    %110 = tpu.matmul %107, %109, %cst_70 {dimension_numbers = #tpu.dot_dimension_numbers<[1], [0], [0], [1], [0, 0, 1, 1], [], []>} : vector<2x64xf32>, vector<64x64xf32>, vector<2x64xf32> -> vector<2x64xf32>
    %c1_71 = arith.constant 1 : index
    %c0_72 = arith.constant 0 : index
    %c0_73 = arith.constant 0 : index
    %111 = vector.load %arg11[%c1_71, %c0_72, %c0_73] : memref<8x1x64xf32, #tpu.memory_space<vmem>>, vector<1x1x64xf32>
    %112 = vector.shape_cast %111 : vector<1x1x64xf32> to vector<1x64xf32>
    %113 = vector.broadcast %112 : vector<1x64xf32> to vector<2x64xf32>
    %114 = arith.addf %110, %113 : vector<2x64xf32>
    %cst_74 = arith.constant 0.000000e+00 : f32
    %115 = vector.broadcast %cst_74 : f32 to vector<2x64xf32>
    %116 = arith.cmpf ogt, %114, %115 : vector<2x64xf32>
    %cst_75 = arith.constant 0.00999999977 : f32
    %117 = vector.broadcast %cst_75 : f32 to vector<2x64xf32>
    %118 = arith.mulf %117, %114 : vector<2x64xf32>
    %119 = arith.select %116, %114, %118 : vector<2x64xi1>, vector<2x64xf32>
    %c1_76 = arith.constant 1 : index
    %c0_77 = arith.constant 0 : index
    %c0_78 = arith.constant 0 : index
    %120 = vector.load %arg12[%c1_76, %c0_77, %c0_78] : memref<8x64x16xf32, #tpu.memory_space<vmem>>, vector<1x64x16xf32>
    %121 = vector.shape_cast %120 : vector<1x64x16xf32> to vector<64x16xf32>
    %cst_79 = arith.constant dense<0.000000e+00> : vector<2x16xf32>
    %122 = tpu.matmul %119, %121, %cst_79 {dimension_numbers = #tpu.dot_dimension_numbers<[1], [0], [0], [1], [0, 0, 1, 1], [], []>} : vector<2x64xf32>, vector<64x16xf32>, vector<2x16xf32> -> vector<2x16xf32>
    %c1_80 = arith.constant 1 : index
    %c0_81 = arith.constant 0 : index
    %c0_82 = arith.constant 0 : index
    %123 = vector.load %arg13[%c1_80, %c0_81, %c0_82] : memref<8x1x16xf32, #tpu.memory_space<vmem>>, vector<1x1x16xf32>
    %124 = vector.shape_cast %123 : vector<1x1x16xf32> to vector<1x16xf32>
    %125 = vector.broadcast %124 : vector<1x16xf32> to vector<2x16xf32>
    %126 = arith.addf %122, %125 : vector<2x16xf32>
    %127 = vector.extract_strided_slice %126 {offsets = [0, 0], sizes = [2, 8], strides = [1, 1]} : vector<2x16xf32> to vector<2x8xf32>
    %128 = math.tanh %127 : vector<2x8xf32>
    %129 = vector.extract_strided_slice %126 {offsets = [0, 8], sizes = [2, 8], strides = [1, 1]} : vector<2x16xf32> to vector<2x8xf32>
    %130 = math.exp %128 : vector<2x8xf32>
    %131 = arith.mulf %51, %130 : vector<2x8xf32>
    %132 = arith.addf %131, %129 : vector<2x8xf32>
    %cst_83 = arith.constant dense<0.000000e+00> : vector<2xf32>
    %133 = vector.multi_reduction <add>, %128, %cst_83 [1] : vector<2x8xf32> to vector<2xf32>
    %134 = vector.shape_cast %133 : vector<2xf32> to vector<2x1xf32>
    %135 = arith.addf %97, %134 : vector<2x1xf32>
    %c1_84 = arith.constant 1 : index
    %c0_85 = arith.constant 0 : index
    %c0_86 = arith.constant 0 : index
    %c0_87 = arith.constant 0 : index
    %136 = vector.load %arg5[%c1_84, %c0_85, %c0_86, %c0_87] : memref<4x4x1x8xf32, #tpu.memory_space<vmem>>, vector<1x1x1x8xf32>
    %137 = vector.shape_cast %136 : vector<1x1x1x8xf32> to vector<1x8xf32>
    %138 = vector.broadcast %137 : vector<1x8xf32> to vector<2x8xf32>
    %139 = arith.addf %132, %138 : vector<2x8xf32>
    %c1_88 = arith.constant 1 : index
    %c2_89 = arith.constant 2 : index
    %c0_90 = arith.constant 0 : index
    %c0_91 = arith.constant 0 : index
    %140 = vector.load %arg5[%c1_88, %c2_89, %c0_90, %c0_91] : memref<4x4x1x8xf32, #tpu.memory_space<vmem>>, vector<1x1x1x8xf32>
    %141 = vector.shape_cast %140 : vector<1x1x1x8xf32> to vector<1x8xf32>
    %142 = vector.broadcast %141 : vector<1x8xf32> to vector<2x8xf32>
    %143 = arith.mulf %139, %142 : vector<2x8xf32>
    %c1_92 = arith.constant 1 : index
    %c1_93 = arith.constant 1 : index
    %c0_94 = arith.constant 0 : index
    %c0_95 = arith.constant 0 : index
    %144 = vector.load %arg5[%c1_92, %c1_93, %c0_94, %c0_95] : memref<4x4x1x8xf32, #tpu.memory_space<vmem>>, vector<1x1x1x8xf32>
    %145 = vector.shape_cast %144 : vector<1x1x1x8xf32> to vector<1x8xf32>
    %146 = vector.broadcast %145 : vector<1x8xf32> to vector<2x8xf32>
    %147 = arith.addf %94, %146 : vector<2x8xf32>
    %c1_96 = arith.constant 1 : index
    %c3_97 = arith.constant 3 : index
    %c0_98 = arith.constant 0 : index
    %c0_99 = arith.constant 0 : index
    %148 = vector.load %arg5[%c1_96, %c3_97, %c0_98, %c0_99] : memref<4x4x1x8xf32, #tpu.memory_space<vmem>>, vector<1x1x1x8xf32>
    %149 = vector.shape_cast %148 : vector<1x1x1x8xf32> to vector<1x8xf32>
    %150 = vector.broadcast %149 : vector<1x8xf32> to vector<2x8xf32>
    %151 = arith.mulf %147, %150 : vector<2x8xf32>
    %c2_100 = arith.constant 2 : index
    %c0_101 = arith.constant 0 : index
    %c0_102 = arith.constant 0 : index
    %152 = vector.load %arg9[%c2_100, %c0_101, %c0_102] : memref<8x8x64xf32, #tpu.memory_space<vmem>>, vector<1x8x64xf32>
    %153 = vector.shape_cast %152 : vector<1x8x64xf32> to vector<8x64xf32>
    %cst_103 = arith.constant dense<0.000000e+00> : vector<2x64xf32>
    %154 = tpu.matmul %143, %153, %cst_103 {dimension_numbers = #tpu.dot_dimension_numbers<[1], [0], [0], [1], [0, 0, 1, 1], [], []>} : vector<2x8xf32>, vector<8x64xf32>, vector<2x64xf32> -> vector<2x64xf32>
    %155 = vector.extract_strided_slice %36 {offsets = [0, 128], sizes = [2, 64], strides = [1, 1]} : vector<2x512xf32> to vector<2x64xf32>
    %156 = arith.addf %154, %155 : vector<2x64xf32>
    %cst_104 = arith.constant 0.000000e+00 : f32
    %157 = vector.broadcast %cst_104 : f32 to vector<2x64xf32>
    %158 = arith.cmpf ogt, %156, %157 : vector<2x64xf32>
    %cst_105 = arith.constant 0.00999999977 : f32
    %159 = vector.broadcast %cst_105 : f32 to vector<2x64xf32>
    %160 = arith.mulf %159, %156 : vector<2x64xf32>
    %161 = arith.select %158, %156, %160 : vector<2x64xi1>, vector<2x64xf32>
    %c2_106 = arith.constant 2 : index
    %c0_107 = arith.constant 0 : index
    %c0_108 = arith.constant 0 : index
    %162 = vector.load %arg10[%c2_106, %c0_107, %c0_108] : memref<8x64x64xf32, #tpu.memory_space<vmem>>, vector<1x64x64xf32>
    %163 = vector.shape_cast %162 : vector<1x64x64xf32> to vector<64x64xf32>
    %cst_109 = arith.constant dense<0.000000e+00> : vector<2x64xf32>
    %164 = tpu.matmul %161, %163, %cst_109 {dimension_numbers = #tpu.dot_dimension_numbers<[1], [0], [0], [1], [0, 0, 1, 1], [], []>} : vector<2x64xf32>, vector<64x64xf32>, vector<2x64xf32> -> vector<2x64xf32>
    %c2_110 = arith.constant 2 : index
    %c0_111 = arith.constant 0 : index
    %c0_112 = arith.constant 0 : index
    %165 = vector.load %arg11[%c2_110, %c0_111, %c0_112] : memref<8x1x64xf32, #tpu.memory_space<vmem>>, vector<1x1x64xf32>
    %166 = vector.shape_cast %165 : vector<1x1x64xf32> to vector<1x64xf32>
    %167 = vector.broadcast %166 : vector<1x64xf32> to vector<2x64xf32>
    %168 = arith.addf %164, %167 : vector<2x64xf32>
    %cst_113 = arith.constant 0.000000e+00 : f32
    %169 = vector.broadcast %cst_113 : f32 to vector<2x64xf32>
    %170 = arith.cmpf ogt, %168, %169 : vector<2x64xf32>
    %cst_114 = arith.constant 0.00999999977 : f32
    %171 = vector.broadcast %cst_114 : f32 to vector<2x64xf32>
    %172 = arith.mulf %171, %168 : vector<2x64xf32>
    %173 = arith.select %170, %168, %172 : vector<2x64xi1>, vector<2x64xf32>
    %c2_115 = arith.constant 2 : index
    %c0_116 = arith.constant 0 : index
    %c0_117 = arith.constant 0 : index
    %174 = vector.load %arg12[%c2_115, %c0_116, %c0_117] : memref<8x64x16xf32, #tpu.memory_space<vmem>>, vector<1x64x16xf32>
    %175 = vector.shape_cast %174 : vector<1x64x16xf32> to vector<64x16xf32>
    %cst_118 = arith.constant dense<0.000000e+00> : vector<2x16xf32>
    %176 = tpu.matmul %173, %175, %cst_118 {dimension_numbers = #tpu.dot_dimension_numbers<[1], [0], [0], [1], [0, 0, 1, 1], [], []>} : vector<2x64xf32>, vector<64x16xf32>, vector<2x16xf32> -> vector<2x16xf32>
    %c2_119 = arith.constant 2 : index
    %c0_120 = arith.constant 0 : index
    %c0_121 = arith.constant 0 : index
    %177 = vector.load %arg13[%c2_119, %c0_120, %c0_121] : memref<8x1x16xf32, #tpu.memory_space<vmem>>, vector<1x1x16xf32>
    %178 = vector.shape_cast %177 : vector<1x1x16xf32> to vector<1x16xf32>
    %179 = vector.broadcast %178 : vector<1x16xf32> to vector<2x16xf32>
    %180 = arith.addf %176, %179 : vector<2x16xf32>
    %181 = vector.extract_strided_slice %180 {offsets = [0, 0], sizes = [2, 8], strides = [1, 1]} : vector<2x16xf32> to vector<2x8xf32>
    %182 = math.tanh %181 : vector<2x8xf32>
    %183 = vector.extract_strided_slice %180 {offsets = [0, 8], sizes = [2, 8], strides = [1, 1]} : vector<2x16xf32> to vector<2x8xf32>
    %184 = math.exp %182 : vector<2x8xf32>
    %185 = arith.mulf %151, %184 : vector<2x8xf32>
    %186 = arith.addf %185, %183 : vector<2x8xf32>
    %cst_122 = arith.constant dense<0.000000e+00> : vector<2xf32>
    %187 = vector.multi_reduction <add>, %182, %cst_122 [1] : vector<2x8xf32> to vector<2xf32>
    %188 = vector.shape_cast %187 : vector<2xf32> to vector<2x1xf32>
    %189 = arith.addf %135, %188 : vector<2x1xf32>
    %c3_123 = arith.constant 3 : index
    %c0_124 = arith.constant 0 : index
    %c0_125 = arith.constant 0 : index
    %190 = vector.load %arg9[%c3_123, %c0_124, %c0_125] : memref<8x8x64xf32, #tpu.memory_space<vmem>>, vector<1x8x64xf32>
    %191 = vector.shape_cast %190 : vector<1x8x64xf32> to vector<8x64xf32>
    %cst_126 = arith.constant dense<0.000000e+00> : vector<2x64xf32>
    %192 = tpu.matmul %186, %191, %cst_126 {dimension_numbers = #tpu.dot_dimension_numbers<[1], [0], [0], [1], [0, 0, 1, 1], [], []>} : vector<2x8xf32>, vector<8x64xf32>, vector<2x64xf32> -> vector<2x64xf32>
    %193 = vector.extract_strided_slice %36 {offsets = [0, 192], sizes = [2, 64], strides = [1, 1]} : vector<2x512xf32> to vector<2x64xf32>
    %194 = arith.addf %192, %193 : vector<2x64xf32>
    %cst_127 = arith.constant 0.000000e+00 : f32
    %195 = vector.broadcast %cst_127 : f32 to vector<2x64xf32>
    %196 = arith.cmpf ogt, %194, %195 : vector<2x64xf32>
    %cst_128 = arith.constant 0.00999999977 : f32
    %197 = vector.broadcast %cst_128 : f32 to vector<2x64xf32>
    %198 = arith.mulf %197, %194 : vector<2x64xf32>
    %199 = arith.select %196, %194, %198 : vector<2x64xi1>, vector<2x64xf32>
    %c3_129 = arith.constant 3 : index
    %c0_130 = arith.constant 0 : index
    %c0_131 = arith.constant 0 : index
    %200 = vector.load %arg10[%c3_129, %c0_130, %c0_131] : memref<8x64x64xf32, #tpu.memory_space<vmem>>, vector<1x64x64xf32>
    %201 = vector.shape_cast %200 : vector<1x64x64xf32> to vector<64x64xf32>
    %cst_132 = arith.constant dense<0.000000e+00> : vector<2x64xf32>
    %202 = tpu.matmul %199, %201, %cst_132 {dimension_numbers = #tpu.dot_dimension_numbers<[1], [0], [0], [1], [0, 0, 1, 1], [], []>} : vector<2x64xf32>, vector<64x64xf32>, vector<2x64xf32> -> vector<2x64xf32>
    %c3_133 = arith.constant 3 : index
    %c0_134 = arith.constant 0 : index
    %c0_135 = arith.constant 0 : index
    %203 = vector.load %arg11[%c3_133, %c0_134, %c0_135] : memref<8x1x64xf32, #tpu.memory_space<vmem>>, vector<1x1x64xf32>
    %204 = vector.shape_cast %203 : vector<1x1x64xf32> to vector<1x64xf32>
    %205 = vector.broadcast %204 : vector<1x64xf32> to vector<2x64xf32>
    %206 = arith.addf %202, %205 : vector<2x64xf32>
    %cst_136 = arith.constant 0.000000e+00 : f32
    %207 = vector.broadcast %cst_136 : f32 to vector<2x64xf32>
    %208 = arith.cmpf ogt, %206, %207 : vector<2x64xf32>
    %cst_137 = arith.constant 0.00999999977 : f32
    %209 = vector.broadcast %cst_137 : f32 to vector<2x64xf32>
    %210 = arith.mulf %209, %206 : vector<2x64xf32>
    %211 = arith.select %208, %206, %210 : vector<2x64xi1>, vector<2x64xf32>
    %c3_138 = arith.constant 3 : index
    %c0_139 = arith.constant 0 : index
    %c0_140 = arith.constant 0 : index
    %212 = vector.load %arg12[%c3_138, %c0_139, %c0_140] : memref<8x64x16xf32, #tpu.memory_space<vmem>>, vector<1x64x16xf32>
    %213 = vector.shape_cast %212 : vector<1x64x16xf32> to vector<64x16xf32>
    %cst_141 = arith.constant dense<0.000000e+00> : vector<2x16xf32>
    %214 = tpu.matmul %211, %213, %cst_141 {dimension_numbers = #tpu.dot_dimension_numbers<[1], [0], [0], [1], [0, 0, 1, 1], [], []>} : vector<2x64xf32>, vector<64x16xf32>, vector<2x16xf32> -> vector<2x16xf32>
    %c3_142 = arith.constant 3 : index
    %c0_143 = arith.constant 0 : index
    %c0_144 = arith.constant 0 : index
    %215 = vector.load %arg13[%c3_142, %c0_143, %c0_144] : memref<8x1x16xf32, #tpu.memory_space<vmem>>, vector<1x1x16xf32>
    %216 = vector.shape_cast %215 : vector<1x1x16xf32> to vector<1x16xf32>
    %217 = vector.broadcast %216 : vector<1x16xf32> to vector<2x16xf32>
    %218 = arith.addf %214, %217 : vector<2x16xf32>
    %219 = vector.extract_strided_slice %218 {offsets = [0, 0], sizes = [2, 8], strides = [1, 1]} : vector<2x16xf32> to vector<2x8xf32>
    %220 = math.tanh %219 : vector<2x8xf32>
    %221 = vector.extract_strided_slice %218 {offsets = [0, 8], sizes = [2, 8], strides = [1, 1]} : vector<2x16xf32> to vector<2x8xf32>
    %222 = math.exp %220 : vector<2x8xf32>
    %223 = arith.mulf %143, %222 : vector<2x8xf32>
    %224 = arith.addf %223, %221 : vector<2x8xf32>
    %cst_145 = arith.constant dense<0.000000e+00> : vector<2xf32>
    %225 = vector.multi_reduction <add>, %220, %cst_145 [1] : vector<2x8xf32> to vector<2xf32>
    %226 = vector.shape_cast %225 : vector<2xf32> to vector<2x1xf32>
    %227 = arith.addf %189, %226 : vector<2x1xf32>
    %c2_146 = arith.constant 2 : index
    %c0_147 = arith.constant 0 : index
    %c0_148 = arith.constant 0 : index
    %c0_149 = arith.constant 0 : index
    %228 = vector.load %arg5[%c2_146, %c0_147, %c0_148, %c0_149] : memref<4x4x1x8xf32, #tpu.memory_space<vmem>>, vector<1x1x1x8xf32>
    %229 = vector.shape_cast %228 : vector<1x1x1x8xf32> to vector<1x8xf32>
    %230 = vector.broadcast %229 : vector<1x8xf32> to vector<2x8xf32>
    %231 = arith.addf %224, %230 : vector<2x8xf32>
    %c2_150 = arith.constant 2 : index
    %c2_151 = arith.constant 2 : index
    %c0_152 = arith.constant 0 : index
    %c0_153 = arith.constant 0 : index
    %232 = vector.load %arg5[%c2_150, %c2_151, %c0_152, %c0_153] : memref<4x4x1x8xf32, #tpu.memory_space<vmem>>, vector<1x1x1x8xf32>
    %233 = vector.shape_cast %232 : vector<1x1x1x8xf32> to vector<1x8xf32>
    %234 = vector.broadcast %233 : vector<1x8xf32> to vector<2x8xf32>
    %235 = arith.mulf %231, %234 : vector<2x8xf32>
    %c2_154 = arith.constant 2 : index
    %c1_155 = arith.constant 1 : index
    %c0_156 = arith.constant 0 : index
    %c0_157 = arith.constant 0 : index
    %236 = vector.load %arg5[%c2_154, %c1_155, %c0_156, %c0_157] : memref<4x4x1x8xf32, #tpu.memory_space<vmem>>, vector<1x1x1x8xf32>
    %237 = vector.shape_cast %236 : vector<1x1x1x8xf32> to vector<1x8xf32>
    %238 = vector.broadcast %237 : vector<1x8xf32> to vector<2x8xf32>
    %239 = arith.addf %186, %238 : vector<2x8xf32>
    %c2_158 = arith.constant 2 : index
    %c3_159 = arith.constant 3 : index
    %c0_160 = arith.constant 0 : index
    %c0_161 = arith.constant 0 : index
    %240 = vector.load %arg5[%c2_158, %c3_159, %c0_160, %c0_161] : memref<4x4x1x8xf32, #tpu.memory_space<vmem>>, vector<1x1x1x8xf32>
    %241 = vector.shape_cast %240 : vector<1x1x1x8xf32> to vector<1x8xf32>
    %242 = vector.broadcast %241 : vector<1x8xf32> to vector<2x8xf32>
    %243 = arith.mulf %239, %242 : vector<2x8xf32>
    %c4 = arith.constant 4 : index
    %c0_162 = arith.constant 0 : index
    %c0_163 = arith.constant 0 : index
    %244 = vector.load %arg9[%c4, %c0_162, %c0_163] : memref<8x8x64xf32, #tpu.memory_space<vmem>>, vector<1x8x64xf32>
    %245 = vector.shape_cast %244 : vector<1x8x64xf32> to vector<8x64xf32>
    %cst_164 = arith.constant dense<0.000000e+00> : vector<2x64xf32>
    %246 = tpu.matmul %235, %245, %cst_164 {dimension_numbers = #tpu.dot_dimension_numbers<[1], [0], [0], [1], [0, 0, 1, 1], [], []>} : vector<2x8xf32>, vector<8x64xf32>, vector<2x64xf32> -> vector<2x64xf32>
    %247 = vector.extract_strided_slice %36 {offsets = [0, 256], sizes = [2, 64], strides = [1, 1]} : vector<2x512xf32> to vector<2x64xf32>
    %248 = arith.addf %246, %247 : vector<2x64xf32>
    %cst_165 = arith.constant 0.000000e+00 : f32
    %249 = vector.broadcast %cst_165 : f32 to vector<2x64xf32>
    %250 = arith.cmpf ogt, %248, %249 : vector<2x64xf32>
    %cst_166 = arith.constant 0.00999999977 : f32
    %251 = vector.broadcast %cst_166 : f32 to vector<2x64xf32>
    %252 = arith.mulf %251, %248 : vector<2x64xf32>
    %253 = arith.select %250, %248, %252 : vector<2x64xi1>, vector<2x64xf32>
    %c4_167 = arith.constant 4 : index
    %c0_168 = arith.constant 0 : index
    %c0_169 = arith.constant 0 : index
    %254 = vector.load %arg10[%c4_167, %c0_168, %c0_169] : memref<8x64x64xf32, #tpu.memory_space<vmem>>, vector<1x64x64xf32>
    %255 = vector.shape_cast %254 : vector<1x64x64xf32> to vector<64x64xf32>
    %cst_170 = arith.constant dense<0.000000e+00> : vector<2x64xf32>
    %256 = tpu.matmul %253, %255, %cst_170 {dimension_numbers = #tpu.dot_dimension_numbers<[1], [0], [0], [1], [0, 0, 1, 1], [], []>} : vector<2x64xf32>, vector<64x64xf32>, vector<2x64xf32> -> vector<2x64xf32>
    %c4_171 = arith.constant 4 : index
    %c0_172 = arith.constant 0 : index
    %c0_173 = arith.constant 0 : index
    %257 = vector.load %arg11[%c4_171, %c0_172, %c0_173] : memref<8x1x64xf32, #tpu.memory_space<vmem>>, vector<1x1x64xf32>
    %258 = vector.shape_cast %257 : vector<1x1x64xf32> to vector<1x64xf32>
    %259 = vector.broadcast %258 : vector<1x64xf32> to vector<2x64xf32>
    %260 = arith.addf %256, %259 : vector<2x64xf32>
    %cst_174 = arith.constant 0.000000e+00 : f32
    %261 = vector.broadcast %cst_174 : f32 to vector<2x64xf32>
    %262 = arith.cmpf ogt, %260, %261 : vector<2x64xf32>
    %cst_175 = arith.constant 0.00999999977 : f32
    %263 = vector.broadcast %cst_175 : f32 to vector<2x64xf32>
    %264 = arith.mulf %263, %260 : vector<2x64xf32>
    %265 = arith.select %262, %260, %264 : vector<2x64xi1>, vector<2x64xf32>
    %c4_176 = arith.constant 4 : index
    %c0_177 = arith.constant 0 : index
    %c0_178 = arith.constant 0 : index
    %266 = vector.load %arg12[%c4_176, %c0_177, %c0_178] : memref<8x64x16xf32, #tpu.memory_space<vmem>>, vector<1x64x16xf32>
    %267 = vector.shape_cast %266 : vector<1x64x16xf32> to vector<64x16xf32>
    %cst_179 = arith.constant dense<0.000000e+00> : vector<2x16xf32>
    %268 = tpu.matmul %265, %267, %cst_179 {dimension_numbers = #tpu.dot_dimension_numbers<[1], [0], [0], [1], [0, 0, 1, 1], [], []>} : vector<2x64xf32>, vector<64x16xf32>, vector<2x16xf32> -> vector<2x16xf32>
    %c4_180 = arith.constant 4 : index
    %c0_181 = arith.constant 0 : index
    %c0_182 = arith.constant 0 : index
    %269 = vector.load %arg13[%c4_180, %c0_181, %c0_182] : memref<8x1x16xf32, #tpu.memory_space<vmem>>, vector<1x1x16xf32>
    %270 = vector.shape_cast %269 : vector<1x1x16xf32> to vector<1x16xf32>
    %271 = vector.broadcast %270 : vector<1x16xf32> to vector<2x16xf32>
    %272 = arith.addf %268, %271 : vector<2x16xf32>
    %273 = vector.extract_strided_slice %272 {offsets = [0, 0], sizes = [2, 8], strides = [1, 1]} : vector<2x16xf32> to vector<2x8xf32>
    %274 = math.tanh %273 : vector<2x8xf32>
    %275 = vector.extract_strided_slice %272 {offsets = [0, 8], sizes = [2, 8], strides = [1, 1]} : vector<2x16xf32> to vector<2x8xf32>
    %276 = math.exp %274 : vector<2x8xf32>
    %277 = arith.mulf %243, %276 : vector<2x8xf32>
    %278 = arith.addf %277, %275 : vector<2x8xf32>
    %cst_183 = arith.constant dense<0.000000e+00> : vector<2xf32>
    %279 = vector.multi_reduction <add>, %274, %cst_183 [1] : vector<2x8xf32> to vector<2xf32>
    %280 = vector.shape_cast %279 : vector<2xf32> to vector<2x1xf32>
    %281 = arith.addf %227, %280 : vector<2x1xf32>
    %c5 = arith.constant 5 : index
    %c0_184 = arith.constant 0 : index
    %c0_185 = arith.constant 0 : index
    %282 = vector.load %arg9[%c5, %c0_184, %c0_185] : memref<8x8x64xf32, #tpu.memory_space<vmem>>, vector<1x8x64xf32>
    %283 = vector.shape_cast %282 : vector<1x8x64xf32> to vector<8x64xf32>
    %cst_186 = arith.constant dense<0.000000e+00> : vector<2x64xf32>
    %284 = tpu.matmul %278, %283, %cst_186 {dimension_numbers = #tpu.dot_dimension_numbers<[1], [0], [0], [1], [0, 0, 1, 1], [], []>} : vector<2x8xf32>, vector<8x64xf32>, vector<2x64xf32> -> vector<2x64xf32>
    %285 = vector.extract_strided_slice %36 {offsets = [0, 320], sizes = [2, 64], strides = [1, 1]} : vector<2x512xf32> to vector<2x64xf32>
    %286 = arith.addf %284, %285 : vector<2x64xf32>
    %cst_187 = arith.constant 0.000000e+00 : f32
    %287 = vector.broadcast %cst_187 : f32 to vector<2x64xf32>
    %288 = arith.cmpf ogt, %286, %287 : vector<2x64xf32>
    %cst_188 = arith.constant 0.00999999977 : f32
    %289 = vector.broadcast %cst_188 : f32 to vector<2x64xf32>
    %290 = arith.mulf %289, %286 : vector<2x64xf32>
    %291 = arith.select %288, %286, %290 : vector<2x64xi1>, vector<2x64xf32>
    %c5_189 = arith.constant 5 : index
    %c0_190 = arith.constant 0 : index
    %c0_191 = arith.constant 0 : index
    %292 = vector.load %arg10[%c5_189, %c0_190, %c0_191] : memref<8x64x64xf32, #tpu.memory_space<vmem>>, vector<1x64x64xf32>
    %293 = vector.shape_cast %292 : vector<1x64x64xf32> to vector<64x64xf32>
    %cst_192 = arith.constant dense<0.000000e+00> : vector<2x64xf32>
    %294 = tpu.matmul %291, %293, %cst_192 {dimension_numbers = #tpu.dot_dimension_numbers<[1], [0], [0], [1], [0, 0, 1, 1], [], []>} : vector<2x64xf32>, vector<64x64xf32>, vector<2x64xf32> -> vector<2x64xf32>
    %c5_193 = arith.constant 5 : index
    %c0_194 = arith.constant 0 : index
    %c0_195 = arith.constant 0 : index
    %295 = vector.load %arg11[%c5_193, %c0_194, %c0_195] : memref<8x1x64xf32, #tpu.memory_space<vmem>>, vector<1x1x64xf32>
    %296 = vector.shape_cast %295 : vector<1x1x64xf32> to vector<1x64xf32>
    %297 = vector.broadcast %296 : vector<1x64xf32> to vector<2x64xf32>
    %298 = arith.addf %294, %297 : vector<2x64xf32>
    %cst_196 = arith.constant 0.000000e+00 : f32
    %299 = vector.broadcast %cst_196 : f32 to vector<2x64xf32>
    %300 = arith.cmpf ogt, %298, %299 : vector<2x64xf32>
    %cst_197 = arith.constant 0.00999999977 : f32
    %301 = vector.broadcast %cst_197 : f32 to vector<2x64xf32>
    %302 = arith.mulf %301, %298 : vector<2x64xf32>
    %303 = arith.select %300, %298, %302 : vector<2x64xi1>, vector<2x64xf32>
    %c5_198 = arith.constant 5 : index
    %c0_199 = arith.constant 0 : index
    %c0_200 = arith.constant 0 : index
    %304 = vector.load %arg12[%c5_198, %c0_199, %c0_200] : memref<8x64x16xf32, #tpu.memory_space<vmem>>, vector<1x64x16xf32>
    %305 = vector.shape_cast %304 : vector<1x64x16xf32> to vector<64x16xf32>
    %cst_201 = arith.constant dense<0.000000e+00> : vector<2x16xf32>
    %306 = tpu.matmul %303, %305, %cst_201 {dimension_numbers = #tpu.dot_dimension_numbers<[1], [0], [0], [1], [0, 0, 1, 1], [], []>} : vector<2x64xf32>, vector<64x16xf32>, vector<2x16xf32> -> vector<2x16xf32>
    %c5_202 = arith.constant 5 : index
    %c0_203 = arith.constant 0 : index
    %c0_204 = arith.constant 0 : index
    %307 = vector.load %arg13[%c5_202, %c0_203, %c0_204] : memref<8x1x16xf32, #tpu.memory_space<vmem>>, vector<1x1x16xf32>
    %308 = vector.shape_cast %307 : vector<1x1x16xf32> to vector<1x16xf32>
    %309 = vector.broadcast %308 : vector<1x16xf32> to vector<2x16xf32>
    %310 = arith.addf %306, %309 : vector<2x16xf32>
    %311 = vector.extract_strided_slice %310 {offsets = [0, 0], sizes = [2, 8], strides = [1, 1]} : vector<2x16xf32> to vector<2x8xf32>
    %312 = math.tanh %311 : vector<2x8xf32>
    %313 = vector.extract_strided_slice %310 {offsets = [0, 8], sizes = [2, 8], strides = [1, 1]} : vector<2x16xf32> to vector<2x8xf32>
    %314 = math.exp %312 : vector<2x8xf32>
    %315 = arith.mulf %235, %314 : vector<2x8xf32>
    %316 = arith.addf %315, %313 : vector<2x8xf32>
    %cst_205 = arith.constant dense<0.000000e+00> : vector<2xf32>
    %317 = vector.multi_reduction <add>, %312, %cst_205 [1] : vector<2x8xf32> to vector<2xf32>
    %318 = vector.shape_cast %317 : vector<2xf32> to vector<2x1xf32>
    %319 = arith.addf %281, %318 : vector<2x1xf32>
    %c3_206 = arith.constant 3 : index
    %c0_207 = arith.constant 0 : index
    %c0_208 = arith.constant 0 : index
    %c0_209 = arith.constant 0 : index
    %320 = vector.load %arg5[%c3_206, %c0_207, %c0_208, %c0_209] : memref<4x4x1x8xf32, #tpu.memory_space<vmem>>, vector<1x1x1x8xf32>
    %321 = vector.shape_cast %320 : vector<1x1x1x8xf32> to vector<1x8xf32>
    %322 = vector.broadcast %321 : vector<1x8xf32> to vector<2x8xf32>
    %323 = arith.addf %316, %322 : vector<2x8xf32>
    %c3_210 = arith.constant 3 : index
    %c2_211 = arith.constant 2 : index
    %c0_212 = arith.constant 0 : index
    %c0_213 = arith.constant 0 : index
    %324 = vector.load %arg5[%c3_210, %c2_211, %c0_212, %c0_213] : memref<4x4x1x8xf32, #tpu.memory_space<vmem>>, vector<1x1x1x8xf32>
    %325 = vector.shape_cast %324 : vector<1x1x1x8xf32> to vector<1x8xf32>
    %326 = vector.broadcast %325 : vector<1x8xf32> to vector<2x8xf32>
    %327 = arith.mulf %323, %326 : vector<2x8xf32>
    %c3_214 = arith.constant 3 : index
    %c1_215 = arith.constant 1 : index
    %c0_216 = arith.constant 0 : index
    %c0_217 = arith.constant 0 : index
    %328 = vector.load %arg5[%c3_214, %c1_215, %c0_216, %c0_217] : memref<4x4x1x8xf32, #tpu.memory_space<vmem>>, vector<1x1x1x8xf32>
    %329 = vector.shape_cast %328 : vector<1x1x1x8xf32> to vector<1x8xf32>
    %330 = vector.broadcast %329 : vector<1x8xf32> to vector<2x8xf32>
    %331 = arith.addf %278, %330 : vector<2x8xf32>
    %c3_218 = arith.constant 3 : index
    %c3_219 = arith.constant 3 : index
    %c0_220 = arith.constant 0 : index
    %c0_221 = arith.constant 0 : index
    %332 = vector.load %arg5[%c3_218, %c3_219, %c0_220, %c0_221] : memref<4x4x1x8xf32, #tpu.memory_space<vmem>>, vector<1x1x1x8xf32>
    %333 = vector.shape_cast %332 : vector<1x1x1x8xf32> to vector<1x8xf32>
    %334 = vector.broadcast %333 : vector<1x8xf32> to vector<2x8xf32>
    %335 = arith.mulf %331, %334 : vector<2x8xf32>
    %c6 = arith.constant 6 : index
    %c0_222 = arith.constant 0 : index
    %c0_223 = arith.constant 0 : index
    %336 = vector.load %arg9[%c6, %c0_222, %c0_223] : memref<8x8x64xf32, #tpu.memory_space<vmem>>, vector<1x8x64xf32>
    %337 = vector.shape_cast %336 : vector<1x8x64xf32> to vector<8x64xf32>
    %cst_224 = arith.constant dense<0.000000e+00> : vector<2x64xf32>
    %338 = tpu.matmul %327, %337, %cst_224 {dimension_numbers = #tpu.dot_dimension_numbers<[1], [0], [0], [1], [0, 0, 1, 1], [], []>} : vector<2x8xf32>, vector<8x64xf32>, vector<2x64xf32> -> vector<2x64xf32>
    %339 = vector.extract_strided_slice %36 {offsets = [0, 384], sizes = [2, 64], strides = [1, 1]} : vector<2x512xf32> to vector<2x64xf32>
    %340 = arith.addf %338, %339 : vector<2x64xf32>
    %cst_225 = arith.constant 0.000000e+00 : f32
    %341 = vector.broadcast %cst_225 : f32 to vector<2x64xf32>
    %342 = arith.cmpf ogt, %340, %341 : vector<2x64xf32>
    %cst_226 = arith.constant 0.00999999977 : f32
    %343 = vector.broadcast %cst_226 : f32 to vector<2x64xf32>
    %344 = arith.mulf %343, %340 : vector<2x64xf32>
    %345 = arith.select %342, %340, %344 : vector<2x64xi1>, vector<2x64xf32>
    %c6_227 = arith.constant 6 : index
    %c0_228 = arith.constant 0 : index
    %c0_229 = arith.constant 0 : index
    %346 = vector.load %arg10[%c6_227, %c0_228, %c0_229] : memref<8x64x64xf32, #tpu.memory_space<vmem>>, vector<1x64x64xf32>
    %347 = vector.shape_cast %346 : vector<1x64x64xf32> to vector<64x64xf32>
    %cst_230 = arith.constant dense<0.000000e+00> : vector<2x64xf32>
    %348 = tpu.matmul %345, %347, %cst_230 {dimension_numbers = #tpu.dot_dimension_numbers<[1], [0], [0], [1], [0, 0, 1, 1], [], []>} : vector<2x64xf32>, vector<64x64xf32>, vector<2x64xf32> -> vector<2x64xf32>
    %c6_231 = arith.constant 6 : index
    %c0_232 = arith.constant 0 : index
    %c0_233 = arith.constant 0 : index
    %349 = vector.load %arg11[%c6_231, %c0_232, %c0_233] : memref<8x1x64xf32, #tpu.memory_space<vmem>>, vector<1x1x64xf32>
    %350 = vector.shape_cast %349 : vector<1x1x64xf32> to vector<1x64xf32>
    %351 = vector.broadcast %350 : vector<1x64xf32> to vector<2x64xf32>
    %352 = arith.addf %348, %351 : vector<2x64xf32>
    %cst_234 = arith.constant 0.000000e+00 : f32
    %353 = vector.broadcast %cst_234 : f32 to vector<2x64xf32>
    %354 = arith.cmpf ogt, %352, %353 : vector<2x64xf32>
    %cst_235 = arith.constant 0.00999999977 : f32
    %355 = vector.broadcast %cst_235 : f32 to vector<2x64xf32>
    %356 = arith.mulf %355, %352 : vector<2x64xf32>
    %357 = arith.select %354, %352, %356 : vector<2x64xi1>, vector<2x64xf32>
    %c6_236 = arith.constant 6 : index
    %c0_237 = arith.constant 0 : index
    %c0_238 = arith.constant 0 : index
    %358 = vector.load %arg12[%c6_236, %c0_237, %c0_238] : memref<8x64x16xf32, #tpu.memory_space<vmem>>, vector<1x64x16xf32>
    %359 = vector.shape_cast %358 : vector<1x64x16xf32> to vector<64x16xf32>
    %cst_239 = arith.constant dense<0.000000e+00> : vector<2x16xf32>
    %360 = tpu.matmul %357, %359, %cst_239 {dimension_numbers = #tpu.dot_dimension_numbers<[1], [0], [0], [1], [0, 0, 1, 1], [], []>} : vector<2x64xf32>, vector<64x16xf32>, vector<2x16xf32> -> vector<2x16xf32>
    %c6_240 = arith.constant 6 : index
    %c0_241 = arith.constant 0 : index
    %c0_242 = arith.constant 0 : index
    %361 = vector.load %arg13[%c6_240, %c0_241, %c0_242] : memref<8x1x16xf32, #tpu.memory_space<vmem>>, vector<1x1x16xf32>
    %362 = vector.shape_cast %361 : vector<1x1x16xf32> to vector<1x16xf32>
    %363 = vector.broadcast %362 : vector<1x16xf32> to vector<2x16xf32>
    %364 = arith.addf %360, %363 : vector<2x16xf32>
    %365 = vector.extract_strided_slice %364 {offsets = [0, 0], sizes = [2, 8], strides = [1, 1]} : vector<2x16xf32> to vector<2x8xf32>
    %366 = math.tanh %365 : vector<2x8xf32>
    %367 = vector.extract_strided_slice %364 {offsets = [0, 8], sizes = [2, 8], strides = [1, 1]} : vector<2x16xf32> to vector<2x8xf32>
    %368 = math.exp %366 : vector<2x8xf32>
    %369 = arith.mulf %335, %368 : vector<2x8xf32>
    %370 = arith.addf %369, %367 : vector<2x8xf32>
    %cst_243 = arith.constant dense<0.000000e+00> : vector<2xf32>
    %371 = vector.multi_reduction <add>, %366, %cst_243 [1] : vector<2x8xf32> to vector<2xf32>
    %372 = vector.shape_cast %371 : vector<2xf32> to vector<2x1xf32>
    %373 = arith.addf %319, %372 : vector<2x1xf32>
    %c7 = arith.constant 7 : index
    %c0_244 = arith.constant 0 : index
    %c0_245 = arith.constant 0 : index
    %374 = vector.load %arg9[%c7, %c0_244, %c0_245] : memref<8x8x64xf32, #tpu.memory_space<vmem>>, vector<1x8x64xf32>
    %375 = vector.shape_cast %374 : vector<1x8x64xf32> to vector<8x64xf32>
    %cst_246 = arith.constant dense<0.000000e+00> : vector<2x64xf32>
    %376 = tpu.matmul %370, %375, %cst_246 {dimension_numbers = #tpu.dot_dimension_numbers<[1], [0], [0], [1], [0, 0, 1, 1], [], []>} : vector<2x8xf32>, vector<8x64xf32>, vector<2x64xf32> -> vector<2x64xf32>
    %377 = vector.extract_strided_slice %36 {offsets = [0, 448], sizes = [2, 64], strides = [1, 1]} : vector<2x512xf32> to vector<2x64xf32>
    %378 = arith.addf %376, %377 : vector<2x64xf32>
    %cst_247 = arith.constant 0.000000e+00 : f32
    %379 = vector.broadcast %cst_247 : f32 to vector<2x64xf32>
    %380 = arith.cmpf ogt, %378, %379 : vector<2x64xf32>
    %cst_248 = arith.constant 0.00999999977 : f32
    %381 = vector.broadcast %cst_248 : f32 to vector<2x64xf32>
    %382 = arith.mulf %381, %378 : vector<2x64xf32>
    %383 = arith.select %380, %378, %382 : vector<2x64xi1>, vector<2x64xf32>
    %c7_249 = arith.constant 7 : index
    %c0_250 = arith.constant 0 : index
    %c0_251 = arith.constant 0 : index
    %384 = vector.load %arg10[%c7_249, %c0_250, %c0_251] : memref<8x64x64xf32, #tpu.memory_space<vmem>>, vector<1x64x64xf32>
    %385 = vector.shape_cast %384 : vector<1x64x64xf32> to vector<64x64xf32>
    %cst_252 = arith.constant dense<0.000000e+00> : vector<2x64xf32>
    %386 = tpu.matmul %383, %385, %cst_252 {dimension_numbers = #tpu.dot_dimension_numbers<[1], [0], [0], [1], [0, 0, 1, 1], [], []>} : vector<2x64xf32>, vector<64x64xf32>, vector<2x64xf32> -> vector<2x64xf32>
    %c7_253 = arith.constant 7 : index
    %c0_254 = arith.constant 0 : index
    %c0_255 = arith.constant 0 : index
    %387 = vector.load %arg11[%c7_253, %c0_254, %c0_255] : memref<8x1x64xf32, #tpu.memory_space<vmem>>, vector<1x1x64xf32>
    %388 = vector.shape_cast %387 : vector<1x1x64xf32> to vector<1x64xf32>
    %389 = vector.broadcast %388 : vector<1x64xf32> to vector<2x64xf32>
    %390 = arith.addf %386, %389 : vector<2x64xf32>
    %cst_256 = arith.constant 0.000000e+00 : f32
    %391 = vector.broadcast %cst_256 : f32 to vector<2x64xf32>
    %392 = arith.cmpf ogt, %390, %391 : vector<2x64xf32>
    %cst_257 = arith.constant 0.00999999977 : f32
    %393 = vector.broadcast %cst_257 : f32 to vector<2x64xf32>
    %394 = arith.mulf %393, %390 : vector<2x64xf32>
    %395 = arith.select %392, %390, %394 : vector<2x64xi1>, vector<2x64xf32>
    %c7_258 = arith.constant 7 : index
    %c0_259 = arith.constant 0 : index
    %c0_260 = arith.constant 0 : index
    %396 = vector.load %arg12[%c7_258, %c0_259, %c0_260] : memref<8x64x16xf32, #tpu.memory_space<vmem>>, vector<1x64x16xf32>
    %397 = vector.shape_cast %396 : vector<1x64x16xf32> to vector<64x16xf32>
    %cst_261 = arith.constant dense<0.000000e+00> : vector<2x16xf32>
    %398 = tpu.matmul %395, %397, %cst_261 {dimension_numbers = #tpu.dot_dimension_numbers<[1], [0], [0], [1], [0, 0, 1, 1], [], []>} : vector<2x64xf32>, vector<64x16xf32>, vector<2x16xf32> -> vector<2x16xf32>
    %c7_262 = arith.constant 7 : index
    %c0_263 = arith.constant 0 : index
    %c0_264 = arith.constant 0 : index
    %399 = vector.load %arg13[%c7_262, %c0_263, %c0_264] : memref<8x1x16xf32, #tpu.memory_space<vmem>>, vector<1x1x16xf32>
    %400 = vector.shape_cast %399 : vector<1x1x16xf32> to vector<1x16xf32>
    %401 = vector.broadcast %400 : vector<1x16xf32> to vector<2x16xf32>
    %402 = arith.addf %398, %401 : vector<2x16xf32>
    %403 = vector.extract_strided_slice %402 {offsets = [0, 0], sizes = [2, 8], strides = [1, 1]} : vector<2x16xf32> to vector<2x8xf32>
    %404 = math.tanh %403 : vector<2x8xf32>
    %405 = vector.extract_strided_slice %402 {offsets = [0, 8], sizes = [2, 8], strides = [1, 1]} : vector<2x16xf32> to vector<2x8xf32>
    %406 = math.exp %404 : vector<2x8xf32>
    %407 = arith.mulf %327, %406 : vector<2x8xf32>
    %408 = arith.addf %407, %405 : vector<2x8xf32>
    %cst_265 = arith.constant dense<0.000000e+00> : vector<2xf32>
    %409 = vector.multi_reduction <add>, %404, %cst_265 [1] : vector<2x8xf32> to vector<2xf32>
    %410 = vector.shape_cast %409 : vector<2xf32> to vector<2x1xf32>
    %411 = arith.addf %373, %410 : vector<2x1xf32>
    %412 = tpu.concatenate %408, %370 in 1 : vector<2x8xf32>, vector<2x8xf32> -> vector<2x16xf32>
    %c0_266 = arith.constant 0 : index
    %c0_267 = arith.constant 0 : index
    %413 = vector.load %arg14[%c0_266, %c0_267] : memref<2x16xf32, #tpu.memory_space<vmem>>, vector<2x16xf32>
    tpu.vector_store %arg14[%c0_266, %c0_267], %412 {strides = array<i32>} : memref<2x16xf32, #tpu.memory_space<vmem>>, vector<2x16xf32>,
    %c0_268 = arith.constant 0 : index
    %c0_269 = arith.constant 0 : index
    %414 = vector.load %arg15[%c0_268, %c0_269] : memref<2x1xf32, #tpu.memory_space<vmem>>, vector<2x1xf32>
    tpu.vector_store %arg15[%c0_268, %c0_269], %411 {strides = array<i32>} : memref<2x1xf32, #tpu.memory_space<vmem>>, vector<2x1xf32>,
    return
  }
}

</mosaic_0001>

<bundles_post_ra>
// kernel: supervised_transformer_forward.1
= control target key start
LH: loop header
LB: loop body
LE: loop exit
PB: predicated region body
PF: predicated region fallthrough
CT: control target
= control target key end

     0   :  { %s5551_s0 = inlined_call_operand.vmem [shape: f32[2,16], index: 0, kind: input, shape index: {}]   ;;  %s5552_s1 = inlined_call_operand.vmem [shape: f32[2,768], index: 1, kind: input, shape index: {}]   ;;  %s5553_s2 = inlined_call_operand.vmem [shape: f32[2,3], index: 2, kind: input, shape index: {}]   ;;  %s5554_s3 = inlined_call_operand.vmem [shape: f32[768,16], index: 3, kind: input, shape index: {}]   ;;  %s5555_s4 = inlined_call_operand.vmem [shape: f32[1,16], index: 4, kind: input, shape index: {}]   ;;  %s5556_s5 = inlined_call_operand.vmem [shape: f32[4,4,1,8], index: 5, kind: input, shape index: {}]   ;;  %s5557_s6 = inlined_call_operand.<no memory space> [shape: f32[1,1], index: 6, kind: input, shape index: {}]   ;;  %s5558_s7 = inlined_call_operand.vmem [shape: f32[46,512], index: 7, kind: input, shape index: {}]   ;;  %s5559_s8 = inlined_call_operand.vmem [shape: f32[1,512], index: 8, kind: input, shape index: {}]   ;;  %s5560_s9 = inlined_call_operand.vmem [shape: f32[8,8,64], index: 9, kind: input, shape index: {}]   ;;  %s5561_s10 = inlined_call_operand.vmem [shape: f32[8,64,64], index: 10, kind: input, shape index: {}]   ;;  %s5562_s11 = inlined_call_operand.vmem [shape: f32[8,1,64], index: 11, kind: input, shape index: {}]   ;;  %s5563_s12 = inlined_call_operand.vmem [shape: f32[8,64,16], index: 12, kind: input, shape index: {}]   ;;  %s5564_s13 = inlined_call_operand.vmem [shape: f32[8,1,16], index: 13, kind: input, shape index: {}]   ;;  %s5565_s14 = inlined_call_operand.hbm [shape: f32[2,16], index: 14, kind: output, shape index: {0}]   ;;  %s5566_s15 = inlined_call_operand.vmem [shape: f32[2,1], index: 15, kind: output, shape index: {1}]  }
   0x1   :  { %v21_v0 = vstv %s5557_s6 }
   0x2   :  { %22 = vst [vmem:[#allocation2] sm:$0x1] %v21_v0 }
   0x3   :  { %v70_v1 = vld [vmem:[%s5554_s3 + $0x80] sm:$0xff]  ;;  %v71_v2 = vld [vmem:[%s5554_s3 + $0x88] sm:$0xff]  ;;  %v4267_v8 = vmov 0   ;;  %v72_v13 = vld [vmem:[%s5554_s3 + $0x90] sm:$0xff]  ;;  %v4268_v14 = vmov 2   ;;  %v163_v48 = vlaneseq }
   0x4   :  { %v54_v3 = vld [vmem:[%s5554_s3] sm:$0xff]  ;;  %v3872_v4 = vpack.c.bf16 %v71_v2, %v70_v1  ;;  %v55_v5 = vld [vmem:[%s5554_s3 + $0x8] sm:$0xff]  ;;  %4205 = vset.pattern.permute.xlu0 %v4267_v8  ;;  %4207 = vset.pattern.permute.xlu1 %v4268_v14  ;;  %v73_v16 = vld [vmem:[%s5554_s3 + $0x98] sm:$0xff]  ;;  %v4269_v46 = vmov 1983009808  }
   0x5   :  { %v102_v6 = vld [vmem:[%s5554_s3 + $0x180] sm:$0xff]  ;;  %v103_v7 = vld [vmem:[%s5554_s3 + $0x188] sm:$0xff]  ;;  %v3874_v9 = vpack.c.bf16 %v55_v5, %v54_v3  ;;  %v56_v17 = vld [vmem:[%s5554_s3 + $0x10] sm:$0xff]  ;;  %v3876_v19 = vpack.c.bf16 %v73_v16, %v72_v13  ;;  %v161_v47 = vunpack.c.l.s4 %v4269_v46  ;;  %v4484_v63 = vshrl.u32 %v163_v48, 7 }
   0x6   :  { %v3904_v10 = vpack.c.bf16 %v103_v7, %v102_v6  ;;  %v86_v11 = vld [vmem:[%s5554_s3 + $0x100] sm:$0xff]  ;;  %v87_v12 = vld [vmem:[%s5554_s3 + $0x108] sm:$0xff]  ;;  %3873 = vmatprep.subr.bf16.mxu0 %v3872_v4  ;;  %v57_v18 = vld [vmem:[%s5554_s3 + $0x18] sm:$0xff] }
   0x7   :  { %v3906_v15 = vpack.c.bf16 %v87_v12, %v86_v11  ;;  %3875 = vmatpush3.bf16.msra.mxu0 %v3874_v9  ;;  %v3878_v20 = vpack.c.bf16 %v57_v18, %v56_v17  ;;  %v104_v21 = vld [vmem:[%s5554_s3 + $0x190] sm:$0xff]  ;;  %v105_v22 = vld [vmem:[%s5554_s3 + $0x198] sm:$0xff]  ;;  %v74_v26 = vld [vmem:[%s5554_s3 + $0xa0] sm:$0xff]  ;;  %v162_v62 = vunpack.c.0.s8 %v161_v47 }
   0x8   :  { %3905 = vmatprep.subr.bf16.mxu1 %v3904_v10  ;;  %v88_v23 = vld [vmem:[%s5554_s3 + $0x110] sm:$0xff]  ;;  %v3908_v24 = vpack.c.bf16 %v105_v22, %v104_v21  ;;  %v89_v25 = vld [vmem:[%s5554_s3 + $0x118] sm:$0xff]  ;;  %v75_v27 = vld [vmem:[%s5554_s3 + $0xa8] sm:$0xff]  ;;  %3877 = vmatprep.subr.bf16.mxu0 %v3876_v19 }
   0x9   :  { %3907 = vmatpush3.bf16.msra.mxu1 %v3906_v15  ;;  %v3910_v28 = vpack.c.bf16 %v89_v25, %v88_v23  ;;  %v3880_v29 = vpack.c.bf16 %v75_v27, %v74_v26  ;;  %v58_v30 = vld [vmem:[%s5554_s3 + $0x20] sm:$0xff]  ;;  %v59_v31 = vld [vmem:[%s5554_s3 + $0x28] sm:$0xff]  ;;  %v76_v38 = vld [vmem:[%s5554_s3 + $0xb0] sm:$0xff]  ;;  %v165_v13 = vsub.s32 %v162_v62, %v4484_v63 }
   0xa   :  { %v106_v32 = vld [vmem:[%s5554_s3 + $0x1a0] sm:$0xff]  ;;  %3909 = vmatprep.subr.bf16.mxu1 %v3908_v24  ;;  %v107_v33 = vld [vmem:[%s5554_s3 + $0x1a8] sm:$0xff]  ;;  %v3882_v36 = vpack.c.bf16 %v59_v31, %v58_v30  ;;  %v77_v39 = vld [vmem:[%s5554_s3 + $0xb8] sm:$0xff] }
   0xb   :  { %v90_v34 = vld [vmem:[%s5554_s3 + $0x120] sm:$0xff]  ;;  %v91_v35 = vld [vmem:[%s5554_s3 + $0x128] sm:$0xff]  ;;  %3879 = vmatpush3.bf16.msra.mxu0 %v3878_v20  ;;  %v3912_v37 = vpack.c.bf16 %v107_v33, %v106_v32  ;;  %v60_v40 = vld [vmem:[%s5554_s3 + $0x30] sm:$0xff]  ;;  %v3884_v42 = vpack.c.bf16 %v77_v39, %v76_v38 }
   0xc   :  { %3881 = vmatprep.subr.bf16.mxu0 %v3880_v29  ;;  %v3914_v41 = vpack.c.bf16 %v91_v35, %v90_v34  ;;  %v61_v43 = vld [vmem:[%s5554_s3 + $0x38] sm:$0xff]  ;;  %v108_v44 = vld [vmem:[%s5554_s3 + $0x1b0] sm:$0xff]  ;;  %v78_v52 = vld [vmem:[%s5554_s3 + $0xc0] sm:$0xff] }
   0xd   :  { %3911 = vmatpush3.bf16.msra.mxu1 %v3910_v28  ;;  %v109_v45 = vld [vmem:[%s5554_s3 + $0x1b8] sm:$0xff]  ;;  %v92_v50 = vld [vmem:[%s5554_s3 + $0x130] sm:$0xff]  ;;  %v79_v53 = vld [vmem:[%s5554_s3 + $0xc8] sm:$0xff]  ;;  %v3886_v54 = vpack.c.bf16 %v61_v43, %v60_v40 }
   0xe   :  { %3913 = vmatprep.subr.bf16.mxu1 %v3912_v37  ;;  %v3916_v49 = vpack.c.bf16 %v109_v45, %v108_v44  ;;  %v93_v51 = vld [vmem:[%s5554_s3 + $0x138] sm:$0xff]  ;;  %v110_v55 = vld [vmem:[%s5554_s3 + $0x1c0] sm:$0xff]  ;;  %v111_v56 = vld [vmem:[%s5554_s3 + $0x1c8] sm:$0xff]  ;;  %v3888_v58 = vpack.c.bf16 %v79_v53, %v78_v52 }
   0xf   :  { %3883 = vmatpush3.bf16.msra.mxu0 %v3882_v36  ;;  %v3918_v57 = vpack.c.bf16 %v93_v51, %v92_v50  ;;  %v62_v59 = vld [vmem:[%s5554_s3 + $0x40] sm:$0xff]  ;;  %v63_v60 = vld [vmem:[%s5554_s3 + $0x48] sm:$0xff]  ;;  %v3920_v0 = vpack.c.bf16 %v111_v56, %v110_v55  ;;  %v80_v2 = vld [vmem:[%s5554_s3 + $0xd0] sm:$0xff] }
  0x10   :  { %3885 = vmatprep.subr.bf16.mxu0 %v3884_v42  ;;  %v94_v61 = vld [vmem:[%s5554_s3 + $0x140] sm:$0xff]  ;;  %v95_v1 = vld [vmem:[%s5554_s3 + $0x148] sm:$0xff]  ;;  %v81_v3 = vld [vmem:[%s5554_s3 + $0xd8] sm:$0xff]  ;;  %v3890_v6 = vpack.c.bf16 %v63_v60, %v62_v59 }
  0x11   :  { %3915 = vmatpush3.bf16.msra.mxu1 %v3914_v41  ;;  %v112_v4 = vld [vmem:[%s5554_s3 + $0x1d0] sm:$0xff]  ;;  %v113_v5 = vld [vmem:[%s5554_s3 + $0x1d8] sm:$0xff]  ;;  %v3922_v8 = vpack.c.bf16 %v95_v1, %v94_v61  ;;  %v3892_v9 = vpack.c.bf16 %v81_v3, %v80_v2  ;;  %v82_v16 = vld [vmem:[%s5554_s3 + $0xe0] sm:$0xff] }
  0x12   :  { %3917 = vmatprep.subr.bf16.mxu1 %v3916_v49  ;;  %v64_v7 = vld [vmem:[%s5554_s3 + $0x50] sm:$0xff]  ;;  %v65_v10 = vld [vmem:[%s5554_s3 + $0x58] sm:$0xff]  ;;  %v3924_v15 = vpack.c.bf16 %v113_v5, %v112_v4  ;;  %v83_v17 = vld [vmem:[%s5554_s3 + $0xe8] sm:$0xff] }
  0x13   :  { %3887 = vmatpush3.bf16.msra.mxu0 %v3886_v54  ;;  %v96_v11 = vld [vmem:[%s5554_s3 + $0x150] sm:$0xff]  ;;  %v97_v12 = vld [vmem:[%s5554_s3 + $0x158] sm:$0xff]  ;;  %v114_v18 = vld [vmem:[%s5554_s3 + $0x1e0] sm:$0xff]  ;;  %v3894_v20 = vpack.c.bf16 %v65_v10, %v64_v7  ;;  %v3896_v24 = vpack.c.bf16 %v83_v17, %v82_v16 }
  0x14   :  { %3889 = vmatprep.subr.bf16.mxu0 %v3888_v58  ;;  %v115_v19 = vld [vmem:[%s5554_s3 + $0x1e8] sm:$0xff]  ;;  %v3926_v21 = vpack.c.bf16 %v97_v12, %v96_v11  ;;  %v66_v22 = vld [vmem:[%s5554_s3 + $0x60] sm:$0xff]  ;;  %v84_v32 = vld [vmem:[%s5554_s3 + $0xf0] sm:$0xff] }
  0x15   :  { %3919 = vmatpush3.bf16.msra.mxu1 %v3918_v57  ;;  %v52_v23 = vld [vmem:[%s5552_s1] sm:$0xff]  ;;  %v67_v25 = vld [vmem:[%s5554_s3 + $0x68] sm:$0xff]  ;;  %v3928_v30 = vpack.c.bf16 %v115_v19, %v114_v18  ;;  %v85_v33 = vld [vmem:[%s5554_s3 + $0xf8] sm:$0xff] }
  0x16   :  { %3921 = vmatprep.subr.bf16.mxu1 %v3920_v0  ;;  %v98_v26 = vld [vmem:[%s5554_s3 + $0x160] sm:$0xff]  ;;  %v166_v27 = vrot.slane %v52_v23, %v165_v13  ;;  %v159_v29 = vcombine.high %v52_v23, %v52_v23  ;;  %v99_v31 = vld [vmem:[%s5554_s3 + $0x168] sm:$0xff]  ;;  %v116_v35 = vld [vmem:[%s5554_s3 + $0x1f0] sm:$0xff]  ;;  %v3898_v39 = vpack.c.bf16 %v67_v25, %v66_v22  ;;  %v3900_v42 = vpack.c.bf16 %v85_v33, %v84_v32 }
  0x17   :  { %3891 = vmatpush3.bf16.msra.mxu0 %v3890_v6  ;;  %v400_v28 = vld [vmem:[%s5553_s2] sm:$0x3]  ;;  %v117_v36 = vld [vmem:[%s5554_s3 + $0x1f8] sm:$0xff]  ;;  %v3930_v41 = vpack.c.bf16 %v99_v31, %v98_v26  ;;  %v68_v43 = vld [vmem:[%s5554_s3 + $0x70] sm:$0xff] }
  0x18   :  { %3893 = vmatprep.subr.bf16.mxu0 %v3892_v9  ;;  %v401_v34 = vmul.f32 10.0, %v400_v28  ;;  %v174_v37 = vcombine.high %v166_v27, %v166_v27  ;;  %v173_v38 = vrot.slane %v159_v29, %v165_v13  ;;  %v69_v44 = vld [vmem:[%s5554_s3 + $0x78] sm:$0xff]  ;;  %v100_v45 = vld [vmem:[%s5554_s3 + $0x170] sm:$0xff]  ;;  %v3932_v47 = vpack.c.bf16 %v117_v36, %v116_v35  ;;  %v134_v51 = vld [vmem:[%s5554_s3 + $0x280] sm:$0xff] }
  0x19   :  { %3923 = vmatpush3.bf16.msra.mxu1 %v3922_v8  ;;  %v101_v49 = vld [vmem:[%s5554_s3 + $0x178] sm:$0xff]  ;;  %v135_v52 = vld [vmem:[%s5554_s3 + $0x288] sm:$0xff]  ;;  %v3902_v53 = vpack.c.bf16 %v69_v44, %v68_v43  ;;  %v118_v57 = vld [vmem:[%s5554_s3 + $0x200] sm:$0xff] }
  0x1a   :  { %3925 = vmatprep.subr.bf16.mxu1 %v3924_v15  ;;  %v3051_v40 = vadd.f32 -0.0001, %v401_v34  ;;  %v175_v46 = vcombine.high %v173_v38, %v173_v38  ;;  %254 = vmatprep.mubr.f32.mxu0 %v174_v37  ;;  %v3934_v55 = vpack.c.bf16 %v101_v49, %v100_v45  ;;  %v3936_v56 = vpack.c.bf16 %v135_v52, %v134_v51  ;;  %v119_v58 = vld [vmem:[%s5554_s3 + $0x208] sm:$0xff]  ;;  %v136_v59 = vld [vmem:[%s5554_s3 + $0x290] sm:$0xff]  ;;  %v137_v60 = vld [vmem:[%s5554_s3 + $0x298] sm:$0xff] }
  0x1b   :  { %3895 = vmatpush3.bf16.msra.mxu0 %v3894_v20  ;;  %v3938_v61 = vpack.c.bf16 %v119_v58, %v118_v57  ;;  %v4589_v62 = vld.sshfl [vmem:[%s5552_s1 + $0x8] sm:$0x33 pattern:$0x76325410]  ;;  %v3940_v0 = vpack.c.bf16 %v137_v60, %v136_v59  ;;  %v120_v1 = vld [vmem:[%s5554_s3 + $0x210] sm:$0xff]  ;;  %v121_v2 = vld [vmem:[%s5554_s3 + $0x218] sm:$0xff] }
  0x1c   :  { %3897 = vmatprep.subr.bf16.mxu0 %v3896_v24  ;;  %v4188_v50 = vtrunc.f32 %v3051_v40  ;;  %324 = vmatprep.mubr.f32.mxu1 %v175_v46  ;;  %v183_v3 = vcombine.high %v4589_v62, %v4589_v62 }
  0x1d   :  { %3927 = vmatpush3.bf16.msra.mxu1 %v3926_v21 }
  0x1e   :  { %3929 = vmatprep.subr.bf16.mxu1 %v3928_v30  ;;  %v4189_v54 = vcvt.f32.s32 %v4188_v50 }
  0x1f   :  { %3899 = vmatpush3.bf16.msra.mxu0 %v3898_v39 }
  0x20   :  { %3901 = vmatprep.subr.bf16.mxu0 %v3900_v42  ;;  %407 = vperm.xlu0 %4205, %v4189_v54  }
  0x21   :  { %3931 = vmatpush3.bf16.msra.mxu1 %v3930_v41  ;;  %417 = vperm.xlu1 %4207, %v4189_v54  }
  0x22   :  { %3933 = vmatprep.subr.bf16.mxu1 %v3932_v47 }
  0x23   :  { %3903 = vmatpush3.bf16.msra.mxu0 %v3902_v53 }
  0x24   :  { %3937 = vmatprep.subr.bf16.mxu0 %v3936_v56 }
  0x25   :  { %3935 = vmatpush3.bf16.msra.mxu1 %v3934_v55 }
  0x26   :  { %23 = vsyncpa [#allocation4], 0  ;;  %v4270_v4 = vmov 1   ;;  %v138_v5 = vld [vmem:[%s5554_s3 + $0x2a0] sm:$0xff]  ;;  %v139_v6 = vld [vmem:[%s5554_s3 + $0x2a8] sm:$0xff]  ;;  %255 = vmatmul.mubr.f32.vlgmr.msra.gmra.mrb[0].mxu0 %v166_v27  ;;  %v3942_v7 = vpack.c.bf16 %v121_v2, %v120_v1  ;;  %v4271_v13 = vmov 0.0  }
  0x27   :  { %4206 = vset.pattern.permute.xlu0 %v4270_v4  ;;  %3939 = vmatpush3.bf16.msra.mxu0 %v3938_v61  ;;  %v3944_v8 = vpack.c.bf16 %v139_v6, %v138_v5  ;;  %v122_v9 = vld [vmem:[%s5554_s3 + $0x220] sm:$0xff]  ;;  %v123_v10 = vld [vmem:[%s5554_s3 + $0x228] sm:$0xff]  ;;  %v140_v11 = vld [vmem:[%s5554_s3 + $0x2b0] sm:$0xff]  ;;  %vm489_vm0 = vcmask 1045504   ;;  %vm4272_vm1 = vmmov 1   ;;  %s4273_s25 = smov 16  }
  0x28   :  { %412 = vperm.xlu0 %4206, %v4189_v54   ;;  %325 = vmatmul.mubr.f32.vlgmr.msra.gmra.mrb[0].mxu1 %v173_v38  ;;  %v141_v12 = vld [vmem:[%s5554_s3 + $0x2b8] sm:$0xff]  ;;  %v3946_v15 = vpack.c.bf16 %v123_v10, %v122_v9  ;;  %v124_v17 = vld [vmem:[%s5554_s3 + $0x230] sm:$0xff]  ;;  %v142_v19 = vld [vmem:[%s5554_s3 + $0x2c0] sm:$0xff]  ;;  %s4274_s26 = smov 36   ;;  %s4275_s27 = smov 26   ;;  %vm4276_vm6 = vmmov 0  }
  0x29   :  { %3941 = vmatprep.subr.bf16.mxu0 %v3940_v0  ;;  %394 = vmatprep.mubr.f32.mxu0 %v183_v3  ;;  %v3948_v16 = vpack.c.bf16 %v141_v12, %v140_v11  ;;  %v125_v18 = vld [vmem:[%s5554_s3 + $0x238] sm:$0xff]  ;;  %v126_v22 = vld [vmem:[%s5554_s3 + $0x240] sm:$0xff]  ;;  %v127_v23 = vld [vmem:[%s5554_s3 + $0x248] sm:$0xff]  ;;  %v405_v0 = vand.u32 127, %v163_v48  ;;  %vm433_vm7 = vcmask 130048   ;;  %vm435_vm8 = vcmask 211968  }
  0x2a   :  { %566 = vmatprep.mubr.f32.mxu1 %v4271_v13  ;;  %v3950_v20 = vpack.c.bf16 %v125_v18, %v124_v17  ;;  %v144_v24 = vld [vmem:[%s5554_s3 + $0x2d0] sm:$0xff]  ;;  %v145_v25 = vld [vmem:[%s5554_s3 + $0x2d8] sm:$0xff]  ;;  %v3954_v26 = vpack.c.bf16 %v127_v23, %v126_v22  ;;  %v146_v30 = vld [vmem:[%s5554_s3 + $0x2e0] sm:$0xff]  ;;  %vm437_vm9 = vcmask 293888   ;;  %vm485_vm10 = vcmask 375808   ;;  %s4279_s19 = smov 64  }
  0x2b   :  { %3943 = vmatpush3.bf16.msra.mxu0 %v3942_v7  ;;  %v3956_v27 = vpack.c.bf16 %v145_v25, %v144_v24  ;;  %v128_v28 = vld [vmem:[%s5554_s3 + $0x250] sm:$0xff]  ;;  %v129_v29 = vld [vmem:[%s5554_s3 + $0x258] sm:$0xff]  ;;  %v147_v31 = vld [vmem:[%s5554_s3 + $0x2e8] sm:$0xff]  ;;  %vm693_vm11 = vcmask 64512   ;;  %vm785_vm13 = vcmask 523264   ;;  %s4280_s30 = smov 120  }
  0x2c   :  { %4208 = vset.pattern.permute.xlu0 %v4268_v14  ;;  %3945 = vmatprep.subr.bf16.mxu0 %v3944_v8  ;;  %v143_v14 = vld [vmem:[%s5554_s3 + $0x2c8] sm:$0xff]  ;;  %v3958_v32 = vpack.c.bf16 %v129_v29, %v128_v28  ;;  %v3960_v33 = vpack.c.bf16 %v147_v31, %v146_v30  ;;  %v130_v34 = vld [vmem:[%s5554_s3 + $0x260] sm:$0xff]  ;;  %v148_v36 = vld [vmem:[%s5554_s3 + $0x2f0] sm:$0xff] }
  0x2d   :  { %v3952_v21 = vpack.c.bf16 %v143_v14, %v142_v19  ;;  %v131_v35 = vld [vmem:[%s5554_s3 + $0x268] sm:$0xff]  ;;  %v149_v37 = vld [vmem:[%s5554_s3 + $0x2f8] sm:$0xff]  ;;  %v132_v40 = vld [vmem:[%s5554_s3 + $0x270] sm:$0xff] }
  0x2e   :  { %v3962_v38 = vpack.c.bf16 %v131_v35, %v130_v34  ;;  %v3964_v39 = vpack.c.bf16 %v149_v37, %v148_v36  ;;  %v133_v41 = vld [vmem:[%s5554_s3 + $0x278] sm:$0xff]  ;;  %v440_v43 = vld [vmem:[%s5558_s7 + $0x8] sm:$0xff]  ;;  %v439_v45 = vld [vmem:[%s5558_s7] sm:$0xff] }
  0x2f   :  { %3947 = vmatpush3.bf16.msra.mxu0 %v3946_v15  ;;  %v3966_v42 = vpack.c.bf16 %v133_v41, %v132_v40  ;;  %v444_v44 = vld [vmem:[%s5558_s7 + $0x28] sm:$0xff]  ;;  %v443_v47 = vld [vmem:[%s5558_s7 + $0x20] sm:$0xff]  ;;  %vm4710_vm2 = vmpackc.low %vm489_vm0, %vm4272_vm1 }
  0x30   :  { %3949 = vmatprep.subr.bf16.mxu0 %v3948_v16  ;;  %v3968_v46 = vpack.c.bf16 %v444_v44, %v440_v43  ;;  %v3970_v49 = vpack.c.bf16 %v443_v47, %v439_v45  ;;  %v448_v50 = vld [vmem:[%s5558_s7 + $0x48] sm:$0xff]  ;;  %v447_v53 = vld [vmem:[%s5558_s7 + $0x40] sm:$0xff]  ;;  %v442_v1 = vld [vmem:[%s5558_s7 + $0x18] sm:$0xff] }
  0x31   :  { %v452_v51 = vld [vmem:[%s5558_s7 + $0x68] sm:$0xff]  ;;  %v451_v54 = vld [vmem:[%s5558_s7 + $0x60] sm:$0xff]  ;;  %v446_v2 = vld [vmem:[%s5558_s7 + $0x38] sm:$0xff] }
  0x32   :  { %3969 = vmatprep.subr.bf16.mxu1 %v3968_v46  ;;  %v3972_v52 = vpack.c.bf16 %v452_v51, %v448_v50  ;;  %v3974_v55 = vpack.c.bf16 %v451_v54, %v447_v53  ;;  %v456_v56 = vld [vmem:[%s5558_s7 + $0x88] sm:$0xff]  ;;  %v455_v59 = vld [vmem:[%s5558_s7 + $0x80] sm:$0xff]  ;;  %v3982_v3 = vpack.c.bf16 %v446_v2, %v442_v1  ;;  %v441_v23 = vld [vmem:[%s5558_s7 + $0x10] sm:$0xff]  ;;  %v4277_v54 = vmov 0.0|0.0  }
  0x33   :  { %3951 = vmatpush3.bf16.msra.mxu0 %v3950_v20  ;;  %3971 = vmatpush1.bf16.msra.mxu1 %v3970_v49  ;;  %v460_v57 = vld [vmem:[%s5558_s7 + $0xa8] sm:$0x3f]  ;;  %v459_v60 = vld [vmem:[%s5558_s7 + $0xa0] sm:$0x3f]  ;;  %v445_v24 = vld [vmem:[%s5558_s7 + $0x30] sm:$0xff] }
  0x34   :  { %3953 = vmatprep.subr.bf16.mxu0 %v3952_v21  ;;  %3973 = vmatprep.subr.bf16.mxu1 %v3972_v52  ;;  %v3976_v58 = vpack.c.bf16 %v460_v57, %v456_v56  ;;  %v3049_v10 = vld [vmem:[%s5555_s4] ss:$0 sm:$0xff]  ;;  %v454_v28 = vld [vmem:[%s5558_s7 + $0x78] sm:$0xff]  ;;  %v3984_v31 = vpack.c.bf16 %v445_v24, %v441_v23  ;;  %v449_v34 = vld [vmem:[%s5558_s7 + $0x50] sm:$0xff] }
  0x35   :  { %v453_v35 = vld [vmem:[%s5558_s7 + $0x70] sm:$0xff]  ;;  %v458_v37 = vld [vmem:[%s5558_s7 + $0x98] sm:$0xff]  ;;  %v4768_v44 = vld [vmem:[%s5551_s0] sm:$0x3] }
  0x36   :  { %v457_v41 = vld [vmem:[%s5558_s7 + $0x90] sm:$0xff]  ;;  %v3059_v45 = vld [vmem:[%s5556_s5] ss:$0 sm:$0xff]  ;;  %v3061_v47 = vld [vmem:[%s5556_s5 + $0x2] ss:$0 sm:$0xff] }
  0x37   :  { %3955 = vmatpush3.bf16.msra.mxu0 %v3954_v26  ;;  %3975 = vmatpush1.bf16.msra.mxu1 %v3974_v55  ;;  %v660_v46 = vadd.f32 %v3059_v45, %v4768_v44  ;;  %v692_v49 = vld [vmem:[%s5560_s9] sm:$0xff]  ;;  %v771_v52 = vld [vmem:[%s5561_s10 + $0x8] sm:$0xff]  ;;  %v772_v53 = vld [vmem:[%s5561_s10 + $0x10] sm:$0xff] }
  0x38   :  { %3957 = vmatprep.subr.bf16.mxu0 %v3956_v27  ;;  %3978 = vmatprep.subr.msk.bf16.mxu1 %vm4710_vm2, %v3976_v58  ;;  %v450_v27 = vld [vmem:[%s5558_s7 + $0x58] sm:$0xff]  ;;  %v770_v51 = vld [vmem:[%s5561_s10] sm:$0xff]  ;;  %v776_v61 = vld [vmem:[%s5561_s10 + $0x30] sm:$0xff] }
  0x39   :  { %v4786_v50 = vmul.f32 %v3061_v47, %v660_v46  ;;  %v3997_v55 = vpack.c.bf16 %v771_v52, %v770_v51  ;;  %v773_v56 = vld [vmem:[%s5561_s10 + $0x18] sm:$0xff]  ;;  %v774_v58 = vld [vmem:[%s5561_s10 + $0x20] sm:$0xff]  ;;  %v863_v2 = vld [vmem:[%s5563_s12 + $0x8] sm:$0xff] }
  0x3a   :  { %v4000_v57 = vpack.c.bf16 %v773_v56, %v772_v53  ;;  %v862_v1 = vld [vmem:[%s5563_s12] sm:$0xff]  ;;  %v868_v23 = vld [vmem:[%s5563_s12 + $0x30] sm:$0xff]  ;;  %v869_v24 = vld [vmem:[%s5563_s12 + $0x38] sm:$0xff] }
  0x3b   :  { %3959 = vmatpush3.bf16.msra.mxu0 %v3958_v32  ;;  %v3073_v45 = vld [vmem:[%s5561_s10 + $0x40] sm:$0xff]  ;;  %v3074_v46 = vld [vmem:[%s5561_s10 + $0x48] sm:$0xff]  ;;  %v3075_v47 = vld [vmem:[%s5561_s10 + $0x50] sm:$0xff] }
  0x3c   :  { %3961 = vmatprep.subr.bf16.mxu0 %v3960_v33  ;;  %v3986_v33 = vpack.c.bf16 %v454_v28, %v450_v27  ;;  %v4021_v51 = vpack.c.bf16 %v3074_v46, %v3073_v45  ;;  %v3076_v52 = vld [vmem:[%s5561_s10 + $0x58] sm:$0xff]  ;;  %v3077_v56 = vld [vmem:[%s5561_s10 + $0x60] sm:$0xff] }
  0x3f   :  { %3963 = vmatpush3.bf16.msra.mxu0 %v3962_v38  ;;  %v462_v38 = vld [vmem:[%s5558_s7 + $0xb8] sm:$0x3f] }
  0x40   :  { %3965 = vmatprep.subr.bf16.mxu0 %v3964_v39  ;;  %v3988_v39 = vpack.c.bf16 %v453_v35, %v449_v34  ;;  %v3990_v40 = vpack.c.bf16 %v462_v38, %v458_v37  ;;  %v3069_v34 = vld [vmem:[%s5564_s13] ss:$0 sm:$0xff] }
  0x43   :  { %3967 = vmatpush3.bf16.msra.mxu0 %v3966_v42  ;;  %v461_v42 = vld [vmem:[%s5558_s7 + $0xb0] sm:$0x3f]  ;;  %s4278_s7 = smov 8  }
  0x44   :  { %v3993_v43 = vpack.c.bf16 %v461_v42, %v457_v41  ;;  %4008 = vmatprep.subr.bf16.mxu0 %v4277_v54  ;;  %v3100_v42 = vld [vmem:[%s5556_s5 + $0x5] ss:$0 sm:$0xff] }
  0x46   :  { %395 = vmatmul.mubr.f32.vlgmr.msra.gmra.mrb[2].mxu0 %v4589_v62  ;;  %v3979_v62 = vpack.c.bf16 %v459_v60, %v455_v59  ;;  %v775_v59 = vld [vmem:[%s5561_s10 + $0x28] sm:$0xff] }
  0x47   :  { %3568 = vmatprep.mubr.msk.f32.mxu0 %vm4276_vm6, %v4271_v13  ;;  %v4003_v60 = vpack.c.bf16 %v775_v59, %v774_v58 }
  0x48   :  { %3981 = vmatpush1.bf16.msk.msra.mxu1 %vm4710_vm2, %v3979_v62  ;;  %v777_v62 = vld [vmem:[%s5561_s10 + $0x38] sm:$0xff] }
  0x49   :  { %3983 = vmatprep.subr.bf16.mxu1 %v3982_v3  ;;  %v864_v3 = vld [vmem:[%s5563_s12 + $0x10] sm:$0xff] }
  0x9f   :  { %v408_v4 = vpop.permute.xlu0 %407 }
  0xa0   :  { %vm409_vm3 = vcmp.eq.s32.totalorder %v405_v0, %v408_v4  ;;  %v418_v5 = vpop.permute.xlu1 %417  ;;  %v4009_v4 = vpack.c.bf16 %v863_v2, %v862_v1  ;;  %v3080_v1 = vld [vmem:[%s5561_s10 + $0x78] sm:$0xff] }
  0xa1   :  { %v410_v48 = vsel %vm409_vm3, 1.0, %v4271_v13  ;;  %vm419_vm4 = vcmp.eq.s32.totalorder %v405_v0, %v418_v5  ;;  %v865_v5 = vld [vmem:[%s5563_s12 + $0x18] sm:$0xff] }
  0xa2   :  { %422 = vrot.lane.b32.xlu1 %v410_v48, %s4273_s25  ;;  %v420_v6 = vsel %vm419_vm4, 1.0, %v4271_v13  ;;  %4010 = vmatpush3.bf16.msra.mxu0 %v4009_v4  ;;  %v4012_v48 = vpack.c.bf16 %v865_v5, %v864_v3  ;;  %v3084_v3 = vld [vmem:[%s5563_s12 + $0x40] sm:$0xff]  ;;  %v3085_v4 = vld [vmem:[%s5563_s12 + $0x48] sm:$0xff]  ;;  %v3086_v5 = vld [vmem:[%s5563_s12 + $0x50] sm:$0xff] }
  0xa3   :  { %430 = vrot.lane.b32.xlu0 %v420_v6, %s4274_s26  ;;  %4011 = vmatprep.subr.bf16.mxu0 %v4277_v54  ;;  %v866_v6 = vld [vmem:[%s5563_s12 + $0x20] sm:$0xff] }
  0xa6   :  { %4013 = vmatpush3.bf16.msra.mxu0 %v4012_v48  ;;  %v4033_v48 = vpack.c.bf16 %v3085_v4, %v3084_v3  ;;  %v3119_v4 = vld [vmem:[%s5563_s12 + $0x98] sm:$0xff] }
  0xa7   :  { %v413_v7 = vpop.permute.xlu0 %412  ;;  %4014 = vmatprep.subr.bf16.mxu0 %v4277_v54 }
  0xa8   :  { %vm414_vm5 = vcmp.eq.s32.totalorder %v405_v0, %v413_v7  ;;  %v4006_v0 = vpack.c.bf16 %v777_v62, %v776_v61  ;;  %v867_v7 = vld [vmem:[%s5563_s12 + $0x28] sm:$0xff] }
  0xa9   :  { %v415_v8 = vsel %vm414_vm5, 1.0, %v4271_v13 }
  0xaa   :  { %426 = vrot.lane.b32.xlu1 %v415_v8, %s4275_s27  ;;  %v4015_v8 = vpack.c.bf16 %v867_v7, %v866_v6  ;;  %v3087_v6 = vld [vmem:[%s5563_s12 + $0x58] sm:$0xff] }
  0xab   :  { %v4036_v7 = vpack.c.bf16 %v3087_v6, %v3086_v5  ;;  %v3121_v6 = vld [vmem:[%s5563_s12 + $0xa8] sm:$0xff] }
  0xac   :  { %4016 = vmatpush3.bf16.msra.mxu0 %v4015_v8  ;;  %v3088_v8 = vld [vmem:[%s5563_s12 + $0x60] sm:$0xff] }
  0xad   :  { %4017 = vmatprep.subr.bf16.mxu0 %v4277_v54 }
  0xf9   :  { %v3295_v9 = vpop.f32.mrb[0].mxu0 }
  0xfa   :  { %v3296_v11 = vpop.f32.mrb[1].mxu0 }
  0xfb   :  { %v3330_v12 = vpop.f32.mrb[0].mxu1  ;;  %v3297_v15 = vadd.f32 %v3296_v11, %v3295_v9  ;;  %v467_v11 = vsub.s32 0, %v4484_v63 }
  0xfc   :  { %v3331_v16 = vpop.f32.mrb[1].mxu1 }
  0xfd   :  { %v3332_v17 = vadd.f32 %v3331_v16, %v3330_v12  ;;  %v257_v18 = vadd.f32 %v3297_v15, %v3049_v10  ;;  %v4851_v12 = vld [vmem:[%s5559_s8] sm:$0xf] }
  0xfe   :  { %v468_v15 = vrot.slane %v4851_v12, %v467_v11 }
  0xff   :  { %v327_v19 = vadd.f32 %v3332_v17, %v257_v18 }
 0x114   :  { %v423_v14 = vpop.permute.xlu1 %422 }
 0x115   :  { %v431_v29 = vpop.permute.xlu0 %430 }
 0x119   :  { %v3365_v20 = vpop.f32.mrb[2].mxu0 }
 0x11a   :  { %v3366_v21 = vpop.f32.mrb[3].mxu0 }
 0x11b   :  { %v3367_v22 = vadd.f32 %v3366_v21, %v3365_v20 }
 0x11c   :  { %v427_v26 = vpop.permute.xlu1 %426 }
 0x11d   :  { %v397_v25 = vadd.f32 %v3367_v22, %v327_v19 }
 0x11f   :  { %v434_v30 = vsel %vm433_vm7, %v397_v25, %v423_v14  ;;  %v4018_v25 = vpack.c.bf16 %v869_v24, %v868_v23  ;;  %v3091_v23 = vld [vmem:[%s5563_s12 + $0x78] sm:$0xff] }
 0x120   :  { %v436_v32 = vsel %vm435_vm8, %v434_v30, %v427_v26  ;;  %v3067_v26 = vld [vmem:[%s5562_s11] ss:$0 sm:$0xff] }
 0x121   :  { %v438_v36 = vsel %vm437_vm9, %v436_v32, %v431_v29  ;;  %4019 = vmatpush3.bf16.msra.mxu0 %v4018_v25  ;;  %v3063_v32 = vld [vmem:[%s5556_s5 + $0x1] ss:$0 sm:$0xff] }
 0x122   :  { %3054 = vmatmul.mubr.msk.f32.vlgmr.msra.gmra.mrb[2].mxu1 %vm485_vm10, %v438_v36  ;;  %4020 = vmatprep.subr.bf16.mxu0 %v4277_v54  ;;  %v3082_v25 = vld [vmem:[%s5562_s11 + $0x1] ss:$0 sm:$0xff] }
 0x123   :  { %3985 = vmatpush1.bf16.msra.mxu1 %v3984_v31  ;;  %637 = vmatprep.mubr.f32.mxu1 %v4271_v13 }
 0x124   :  { %3987 = vmatprep.subr.bf16.mxu1 %v3986_v33  ;;  %v3065_v33 = vld [vmem:[%s5556_s5 + $0x3] ss:$0 sm:$0xff]  ;;  %677 = vrot.lane.b32.xlu1 %v3063_v32, %s4278_s7 }
 0x125   :  { %688 = vrot.lane.b32.xlu0 %v3065_v33, %s4278_s7  ;;  %v3105_v32 = vld [vmem:[%s5561_s10 + $0x80] sm:$0xff]  ;;  %v3106_v33 = vld [vmem:[%s5561_s10 + $0x88] sm:$0xff] }
 0x127   :  { %3989 = vmatpush1.bf16.msra.mxu1 %v3988_v39 }
 0x128   :  { %3992 = vmatprep.subr.msk.bf16.mxu1 %vm4710_vm2, %v3990_v40  ;;  %v3071_v40 = vld [vmem:[%s5560_s9 + $0x8] sm:$0xff] }
 0x12b   :  { %3995 = vmatpush1.bf16.msk.msra.mxu1 %vm4710_vm2, %v3993_v43 }
 0x12c   :  { %3528 = vmatprep.subr.mxu1 %v4271_v13 }
 0x12e   :  { %3057 = vmatmul.mubr.msk.f32.vlgmr.msra.gmra.mrb[4].mxu1 %vm485_vm10, %v438_v36 }
 0x12f   :  { %3529 = vmatpush3.msra.mxu1 %v692_v49  ;;  %3530 = vmatprep.mubr.msk.f32.mxu1 %vm4276_vm6, %v4271_v13 }
 0x130   :  { %3996 = vmatprep.subr.bf16.mxu1 %v4277_v54 }
 0x132   :  { %3531 = vmatmul.mubr.msk.f32.vlgmr.msra.gmra.mrb[6].mxu1 %vm693_vm11, %v4786_v50 }
 0x133   :  { %3549 = vmatprep.mubr.msk.f32.mxu1 %vm4276_vm6, %v4271_v13  ;;  %3998 = vmatpush3.bf16.msra.mxu1 %v3997_v55  ;;  %v4024_v55 = vpack.c.bf16 %v3076_v52, %v3075_v47  ;;  %v3102_v47 = vld [vmem:[%s5556_s5 + $0x7] ss:$0 sm:$0xff] }
 0x134   :  { %3999 = vmatprep.subr.bf16.mxu1 %v4277_v54 }
 0x137   :  { %4001 = vmatpush3.bf16.msra.mxu1 %v4000_v57  ;;  %v3078_v57 = vld [vmem:[%s5561_s10 + $0x68] sm:$0xff] }
 0x138   :  { %4002 = vmatprep.subr.bf16.mxu1 %v4277_v54 }
 0x13b   :  { %4004 = vmatpush3.bf16.msra.mxu1 %v4003_v60 }
 0x13c   :  { %4005 = vmatprep.subr.bf16.mxu1 %v4277_v54 }
 0x13f   :  { %4007 = vmatpush3.bf16.msra.mxu1 %v4006_v0  ;;  %v3079_v0 = vld [vmem:[%s5561_s10 + $0x70] sm:$0xff] }
 0x140   :  { %3571 = vmatprep.subr.mxu1 %v4271_v13  ;;  %v4030_v2 = vpack.c.bf16 %v3080_v1, %v3079_v0  ;;  %v3116_v0 = vld [vmem:[%s5563_s12 + $0x80] sm:$0xff]  ;;  %v3117_v1 = vld [vmem:[%s5563_s12 + $0x88] sm:$0xff] }
 0x141   :  { %v4057_v3 = vpack.c.bf16 %v3117_v1, %v3116_v0  ;;  %v3140_v0 = vld [vmem:[%s5563_s12 + $0xc0] sm:$0xff]  ;;  %v3141_v1 = vld [vmem:[%s5563_s12 + $0xc8] sm:$0xff] }
 0x196   :  { %v678_v43 = vpop.permute.xlu1 %677 }
 0x197   :  { %v680_v49 = vadd.f32 %v678_v43, %v4768_v44  ;;  %v689_v53 = vpop.permute.xlu0 %688  ;;  %v4027_v44 = vpack.c.bf16 %v3078_v57, %v3077_v56 }
 0x199   :  { %v691_v58 = vmul.f32 %v689_v53, %v680_v49 }
 0x1f5   :  { %v568_v9 = vpop.f32.mrb[2].mxu1 }
 0x1f6   :  { %v4845_v10 = vpop.f32.mrb[3].mxu1  ;;  %v569_v18 = vadd.f32 %v568_v9, %v468_v15  ;;  %v3089_v9 = vld [vmem:[%s5563_s12 + $0x68] sm:$0xff] }
 0x1f7   :  { %v4039_v11 = vpack.c.bf16 %v3089_v9, %v3088_v8  ;;  %v471_v8 = vsub.s32 1, %v4484_v63 }
 0x1f9   :  { %v472_v9 = vrot.slane %v4851_v12, %v471_v8 }
 0x201   :  { %v4854_v16 = vpop.f32.mrb[4].mxu1 }
 0x202   :  { %v4856_v17 = vpop.f32.mrb[5].mxu1 }
 0x205   :  { %v763_v19 = vpop.f32.mrb[6].mxu1 }
 0x206   :  { %v764_v14 = vadd.f32 %v763_v19, %v569_v18  ;;  %v3532_v20 = vpop.f32.mrb[7].mxu1 }
 0x208   :  { %vm767_vm12 = vcmp.gt.f32.partialorder %v764_v14, 0.0  ;;  %v768_v21 = vmul.f32 0.01, %v764_v14 }
 0x20a   :  { %v769_v22 = vsel %vm767_vm12, %v764_v14, %v768_v21 }
 0x20b   :  { %3550 = vmatmul.mubr.msk.f32.vlgmr.msra.gmra.mrb[8].mxu1 %vm785_vm13, %v769_v22  ;;  %v3090_v22 = vld [vmem:[%s5563_s12 + $0x70] sm:$0xff] }
 0x20c   :  { %3573 = vmatprep.mubr.msk.f32.mxu1 %vm4276_vm6, %v4271_v13  ;;  %3572 = vmatpush3.msra.mxu1 %v3071_v40  ;;  %v4042_v24 = vpack.c.bf16 %v3091_v23, %v3090_v22  ;;  %v3123_v22 = vld [vmem:[%s5563_s12 + $0xb8] sm:$0xff]  ;;  %v3114_v23 = vld [vmem:[%s5562_s11 + $0x2] ss:$0 sm:$0xff] }
 0x20d   :  { %4032 = vmatprep.subr.bf16.mxu1 %v4277_v54 }
 0x2de   :  { %v855_v27 = vpop.f32.mrb[8].mxu1 }
 0x2df   :  { %v856_v28 = vadd.f32 %v3067_v26, %v855_v27  ;;  %v3551_v29 = vpop.f32.mrb[9].mxu1 }
 0x2e1   :  { %vm859_vm14 = vcmp.gt.f32.partialorder %v856_v28, 0.0  ;;  %v860_v30 = vmul.f32 0.01, %v856_v28 }
 0x2e3   :  { %v861_v31 = vsel %vm859_vm14, %v856_v28, %v860_v30  ;;  %vm959_vm14 = vcmask 58368  }
 0x2e4   :  { %3569 = vmatmul.mubr.msk.f32.vlgmr.msra.gmra.mrb[4].mxu0 %vm785_vm13, %v861_v31  ;;  %v3103_v31 = vld [vmem:[%s5560_s9 + $0x10] sm:$0xff] }
 0x2e5   :  { %3592 = vmatprep.mubr.msk.f32.mxu0 %vm4276_vm6, %v4271_v13  ;;  %4022 = vmatpush3.bf16.msra.mxu0 %v4021_v51 }
 0x2e6   :  { %4023 = vmatprep.subr.bf16.mxu0 %v4277_v54 }
 0x2e9   :  { %4025 = vmatpush3.bf16.msra.mxu0 %v4024_v55  ;;  %v3096_v55 = vld [vmem:[%s5556_s5 + $0x4] ss:$0 sm:$0xff] }
 0x2ea   :  { %4026 = vmatprep.subr.bf16.mxu0 %v4277_v54 }
 0x2ed   :  { %4028 = vmatpush3.bf16.msra.mxu0 %v4027_v44 }
 0x2ee   :  { %4029 = vmatprep.subr.bf16.mxu0 %v4277_v54 }
 0x2f1   :  { %4031 = vmatpush3.bf16.msra.mxu0 %v4030_v2  ;;  %v3118_v2 = vld [vmem:[%s5563_s12 + $0x90] sm:$0xff] }
 0x2f2   :  { %3614 = vmatprep.subr.mxu0 %v4271_v13  ;;  %v4060_v5 = vpack.c.bf16 %v3119_v4, %v3118_v2  ;;  %v3142_v2 = vld [vmem:[%s5563_s12 + $0xd0] sm:$0xff]  ;;  %v3143_v4 = vld [vmem:[%s5563_s12 + $0xd8] sm:$0xff] }
 0x3b7   :  { %v946_v35 = vpop.f32.mrb[4].mxu0 }
 0x3b8   :  { %v947_v36 = vadd.f32 %v3069_v34, %v946_v35  ;;  %v3570_v37 = vpop.f32.mrb[5].mxu0  ;;  %v3107_v34 = vld [vmem:[%s5561_s10 + $0x90] sm:$0xff]  ;;  %v4045_v35 = vpack.c.bf16 %v3106_v33, %v3105_v32 }
 0x3b9   :  { %v3093_v37 = vld [vmem:[%s5564_s13 + $0x1] ss:$0 sm:$0xff] }
 0x3ba   :  { %4210 = vtanh.f32 %v947_v36 }
 0x3c4   :  { %v4885_v38 = vpop.eup %4210 }
 0x3c5   :  { %v951_v39 = vmul.f32 1.442695, %v4885_v38 }
 0x3c7   :  { %4212 = vpow2.f32 %v951_v39 }
 0x3d1   :  { %v4213_v41 = vpop.eup %4212 }
 0x3d2   :  { %954 = vrot.lane.b32.xlu1 %v4213_v41, %s4278_s7  ;;  %v3109_v41 = vld [vmem:[%s5561_s10 + $0xa0] sm:$0xff] }
 0x3d6   :  { %970 = vrot.lane.b32.xlu1 %v569_v18, %s4279_s19 }
 0x3da   :  { %1269 = vrot.lane.b32.xlu1 %v3100_v42, %s4278_s7  ;;  %v3110_v42 = vld [vmem:[%s5561_s10 + $0xa8] sm:$0xff] }
 0x3db   :  { %v4051_v46 = vpack.c.bf16 %v3110_v42, %v3109_v41  ;;  %v3131_v41 = vld [vmem:[%s5561_s10 + $0xd0] sm:$0xff] }
 0x444   :  { %v955_v59 = vpop.permute.xlu1 %954 }
 0x445   :  { %v957_v60 = vmul.f32 %v955_v59, %v691_v58  ;;  %v3098_v58 = vld [vmem:[%s5556_s5 + $0x6] ss:$0 sm:$0xff] }
 0x447   :  { %v4919_v61 = vadd.f32 %v957_v60, %v947_v36  ;;  %v3108_v36 = vld [vmem:[%s5561_s10 + $0x98] sm:$0xff] }
 0x448   :  { %v971_v15 = vpop.permute.xlu1 %970  ;;  %v4048_v39 = vpack.c.bf16 %v3108_v36, %v3107_v34  ;;  %v3112_v60 = vld [vmem:[%s5561_s10 + $0xb8] sm:$0xff] }
 0x449   :  { %967 = vrot.lane.b32.xlu0 %v4919_v61, %s4280_s30 }
 0x4bb   :  { %v968_v62 = vpop.permute.xlu0 %967 }
 0x4bc   :  { %3574 = vmatmul.mubr.msk.f32.vlgmr.msra.gmra.mrb[10].mxu1 %vm693_vm11, %v968_v62 }
 0x4bd   :  { %3611 = vmatprep.mubr.msk.f32.mxu1 %vm4276_vm6, %v4271_v13  ;;  %4034 = vmatpush3.bf16.msra.mxu1 %v4033_v48  ;;  %v3120_v48 = vld [vmem:[%s5563_s12 + $0xa0] sm:$0xff] }
 0x4be   :  { %4035 = vmatprep.subr.bf16.mxu1 %v4277_v54 }
 0x4c1   :  { %4037 = vmatpush3.bf16.msra.mxu1 %v4036_v7  ;;  %v4063_v7 = vpack.c.bf16 %v3121_v6, %v3120_v48  ;;  %v3144_v48 = vld [vmem:[%s5563_s12 + $0xe0] sm:$0xff]  ;;  %v3145_v6 = vld [vmem:[%s5563_s12 + $0xe8] sm:$0xff] }
 0x4c2   :  { %4038 = vmatprep.subr.bf16.mxu1 %v4277_v54 }
 0x4c5   :  { %4040 = vmatpush3.bf16.msra.mxu1 %v4039_v11  ;;  %v571_v11 = vadd.f32 %v4845_v10, %v472_v9 }
 0x4c6   :  { %4041 = vmatprep.subr.bf16.mxu1 %v4277_v54 }
 0x4c9   :  { %4043 = vmatpush3.bf16.msra.mxu1 %v4042_v24 }
 0x4ca   :  { %4044 = vmatprep.subr.bf16.mxu1 %v4277_v54 }
 0x58f   :  { %v1041_v18 = vpop.f32.mrb[10].mxu1 }
 0x590   :  { %v1042_v19 = vadd.f32 %v1041_v18, %v971_v15  ;;  %v3575_v14 = vpop.f32.mrb[11].mxu1 }
 0x592   :  { %vm1045_vm15 = vcmp.gt.f32.partialorder %v1042_v19, 0.0  ;;  %v1046_v20 = vmul.f32 0.01, %v1042_v19 }
 0x594   :  { %v1047_v21 = vsel %vm1045_vm15, %v1042_v19, %v1046_v20 }
 0x595   :  { %3593 = vmatmul.mubr.msk.f32.vlgmr.msra.gmra.mrb[6].mxu0 %vm785_vm13, %v1047_v21  ;;  %v3122_v21 = vld [vmem:[%s5563_s12 + $0xb0] sm:$0xff] }
 0x596   :  { %3616 = vmatprep.mubr.msk.f32.mxu0 %vm4276_vm6, %v4271_v13  ;;  %3615 = vmatpush3.msra.mxu0 %v3103_v31  ;;  %v4066_v10 = vpack.c.bf16 %v3123_v22, %v3122_v21  ;;  %v3138_v22 = vld [vmem:[%s5562_s11 + $0x3] ss:$0 sm:$0xff] }
 0x597   :  { %4056 = vmatprep.subr.bf16.mxu0 %v4277_v54 }
 0x668   :  { %v1134_v26 = vpop.f32.mrb[6].mxu0 }
 0x669   :  { %v1135_v27 = vadd.f32 %v3082_v25, %v1134_v26  ;;  %v3594_v28 = vpop.f32.mrb[7].mxu0 }
 0x66b   :  { %vm1138_vm0 = vcmp.gt.f32.partialorder %v1135_v27, 0.0  ;;  %v1139_v29 = vmul.f32 0.01, %v1135_v27 }
 0x66d   :  { %v1140_v30 = vsel %vm1138_vm0, %v1135_v27, %v1139_v29  ;;  %v3125_v29 = vld [vmem:[%s5564_s13 + $0x2] ss:$0 sm:$0xff] }
 0x66e   :  { %3612 = vmatmul.mubr.msk.f32.vlgmr.msra.gmra.mrb[12].mxu1 %vm785_vm13, %v1140_v30 }
 0x66f   :  { %3635 = vmatprep.mubr.msk.f32.mxu1 %vm4276_vm6, %v4271_v13  ;;  %4046 = vmatpush3.bf16.msra.mxu1 %v4045_v35  ;;  %v3127_v35 = vld [vmem:[%s5560_s9 + $0x18] sm:$0xff] }
 0x670   :  { %4047 = vmatprep.subr.bf16.mxu1 %v4277_v54 }
 0x673   :  { %4049 = vmatpush3.bf16.msra.mxu1 %v4048_v39  ;;  %v3129_v39 = vld [vmem:[%s5561_s10 + $0xc0] sm:$0xff] }
 0x674   :  { %4050 = vmatprep.subr.bf16.mxu1 %v4277_v54 }
 0x677   :  { %4052 = vmatpush3.bf16.msra.mxu1 %v4051_v46 }
 0x678   :  { %4053 = vmatprep.subr.bf16.mxu1 %v4277_v54 }
 0x741   :  { %v1227_v40 = vpop.f32.mrb[12].mxu1 }
 0x742   :  { %v1228_v43 = vadd.f32 %v3093_v37, %v1227_v40  ;;  %v3613_v45 = vpop.f32.mrb[13].mxu1  ;;  %v3156_v37 = vld [vmem:[%s5556_s5 + $0x9] ss:$0 sm:$0xff] }
 0x743   :  { %v3130_v40 = vld [vmem:[%s5561_s10 + $0xc8] sm:$0xff]  ;;  %v1270_v45 = vpop.permute.xlu1 %1269 }
 0x744   :  { %1236 = vrot.lane.b32.xlu0 %v1228_v43, %s4280_s30  ;;  %4214 = vtanh.f32 %v1228_v43  ;;  %v4069_v42 = vpack.c.bf16 %v3130_v40, %v3129_v39  ;;  %v3132_v43 = vld [vmem:[%s5561_s10 + $0xd8] sm:$0xff]  ;;  %v3166_v39 = vld [vmem:[%s5561_s10 + $0x128] sm:$0xff] }
 0x745   :  { %v4072_v46 = vpack.c.bf16 %v3132_v43, %v3131_v41  ;;  %v3158_v43 = vld [vmem:[%s5556_s5 + $0xb] ss:$0 sm:$0xff] }
 0x748   :  { %1280 = vrot.lane.b32.xlu0 %v3102_v47, %s4278_s7 }
 0x74e   :  { %v5004_v49 = vpop.eup %4214 }
 0x74f   :  { %v1232_v51 = vmul.f32 1.442695, %v5004_v49 }
 0x751   :  { %4216 = vpow2.f32 %v1232_v51  ;;  %v3133_v51 = vld [vmem:[%s5561_s10 + $0xe0] sm:$0xff] }
 0x75b   :  { %v4217_v52 = vpop.eup %4216 }
 0x75c   :  { %v1234_v53 = vmul.f32 %v4217_v52, %v4786_v50  ;;  %v3111_v50 = vld [vmem:[%s5561_s10 + $0xb0] sm:$0xff]  ;;  %v3134_v52 = vld [vmem:[%s5561_s10 + $0xe8] sm:$0xff] }
 0x75d   :  { %v4054_v62 = vpack.c.bf16 %v3112_v60, %v3111_v50  ;;  %v3136_v60 = vld [vmem:[%s5561_s10 + $0xf8] sm:$0xff] }
 0x75f   :  { %4055 = vmatpush3.bf16.msra.mxu1 %v4054_v62 }
 0x760   :  { %3657 = vmatprep.subr.mxu1 %v4271_v13 }
 0x7b6   :  { %v1237_v56 = vpop.permute.xlu0 %1236 }
 0x7b7   :  { %v1239_v57 = vadd.f32 %v1237_v56, %v1234_v53  ;;  %v1272_v53 = vadd.f32 %v1270_v45, %v4919_v61  ;;  %v4075_v56 = vpack.c.bf16 %v3134_v52, %v3133_v51  ;;  %v3135_v61 = vld [vmem:[%s5561_s10 + $0xf0] sm:$0xff]  ;;  %v3152_v52 = vld [vmem:[%s5556_s5 + $0x8] ss:$0 sm:$0xff] }
 0x7b8   :  { %v4078_v62 = vpack.c.bf16 %v3136_v60, %v3135_v61  ;;  %v3172_v60 = vld [vmem:[%s5563_s12 + $0x100] sm:$0xff] }
 0x7b9   :  { %v1252_v44 = vadd.f32 %v3096_v55, %v1239_v57 }
 0x7ba   :  { %v1281_v47 = vpop.permute.xlu0 %1280 }
 0x7bb   :  { %v5014_v59 = vmul.f32 %v3098_v58, %v1252_v44  ;;  %v1283_v55 = vmul.f32 %v1281_v47, %v1272_v53 }
 0x7bd   :  { %3617 = vmatmul.mubr.msk.f32.vlgmr.msra.gmra.mrb[8].mxu0 %vm693_vm11, %v5014_v59 }
 0x7be   :  { %3654 = vmatprep.mubr.msk.f32.mxu0 %vm4276_vm6, %v4271_v13  ;;  %4058 = vmatpush3.bf16.msra.mxu0 %v4057_v3  ;;  %v4081_v3 = vpack.c.bf16 %v3141_v1, %v3140_v0  ;;  %v3174_v0 = vld [vmem:[%s5563_s12 + $0x110] sm:$0xff] }
 0x7bf   :  { %4059 = vmatprep.subr.bf16.mxu0 %v4277_v54 }
 0x7c2   :  { %4061 = vmatpush3.bf16.msra.mxu0 %v4060_v5  ;;  %v4084_v5 = vpack.c.bf16 %v3143_v4, %v3142_v2  ;;  %v3175_v2 = vld [vmem:[%s5563_s12 + $0x118] sm:$0xff]  ;;  %v3176_v4 = vld [vmem:[%s5563_s12 + $0x120] sm:$0xff] }
 0x7c3   :  { %4062 = vmatprep.subr.bf16.mxu0 %v4277_v54 }
 0x7c6   :  { %4064 = vmatpush3.bf16.msra.mxu0 %v4063_v7  ;;  %v4087_v7 = vpack.c.bf16 %v3145_v6, %v3144_v48  ;;  %v475_v6 = vsub.s32 2, %v4484_v63 }
 0x7c7   :  { %4065 = vmatprep.subr.bf16.mxu0 %v4277_v54 }
 0x7ca   :  { %4067 = vmatpush3.bf16.msra.mxu0 %v4066_v10 }
 0x7cb   :  { %4068 = vmatprep.subr.bf16.mxu0 %v4277_v54 }
 0x890   :  { %v1355_v15 = vpop.f32.mrb[8].mxu0 }
 0x891   :  { %v1356_v18 = vadd.f32 %v1355_v15, %v571_v11  ;;  %v3618_v19 = vpop.f32.mrb[9].mxu0 }
 0x893   :  { %vm1359_vm1 = vcmp.gt.f32.partialorder %v1356_v18, 0.0  ;;  %v1360_v14 = vmul.f32 0.01, %v1356_v18 }
 0x895   :  { %v1361_v20 = vsel %vm1359_vm1, %v1356_v18, %v1360_v14  ;;  %v3146_v14 = vld [vmem:[%s5563_s12 + $0xf0] sm:$0xff] }
 0x896   :  { %3636 = vmatmul.mubr.msk.f32.vlgmr.msra.gmra.mrb[14].mxu1 %vm785_vm13, %v1361_v20  ;;  %v3147_v20 = vld [vmem:[%s5563_s12 + $0xf8] sm:$0xff] }
 0x897   :  { %3659 = vmatprep.mubr.msk.f32.mxu1 %vm4276_vm6, %v4271_v13  ;;  %3658 = vmatpush3.msra.mxu1 %v3127_v35  ;;  %v4090_v21 = vpack.c.bf16 %v3147_v20, %v3146_v14  ;;  %v3178_v14 = vld [vmem:[%s5563_s12 + $0x130] sm:$0xff]  ;;  %v3170_v20 = vld [vmem:[%s5562_s11 + $0x4] ss:$0 sm:$0xff] }
 0x898   :  { %4080 = vmatprep.subr.bf16.mxu1 %v4277_v54 }
 0x969   :  { %v1448_v24 = vpop.f32.mrb[14].mxu1 }
 0x96a   :  { %v1449_v25 = vadd.f32 %v3114_v23, %v1448_v24  ;;  %v3637_v26 = vpop.f32.mrb[15].mxu1 }
 0x96c   :  { %vm1452_vm2 = vcmp.gt.f32.partialorder %v1449_v25, 0.0  ;;  %v1453_v27 = vmul.f32 0.01, %v1449_v25 }
 0x96e   :  { %v1454_v28 = vsel %vm1452_vm2, %v1449_v25, %v1453_v27  ;;  %v3159_v27 = vld [vmem:[%s5560_s9 + $0x20] sm:$0xff] }
 0x96f   :  { %3655 = vmatmul.mubr.msk.f32.vlgmr.msra.gmra.mrb[10].mxu0 %vm785_vm13, %v1454_v28  ;;  %v3161_v28 = vld [vmem:[%s5561_s10 + $0x100] sm:$0xff] }
 0x970   :  { %3678 = vmatprep.mubr.msk.f32.mxu0 %vm4276_vm6, %v4271_v13  ;;  %4070 = vmatpush3.bf16.msra.mxu0 %v4069_v42 }
 0x971   :  { %4071 = vmatprep.subr.bf16.mxu0 %v4277_v54 }
 0x974   :  { %4073 = vmatpush3.bf16.msra.mxu0 %v4072_v46 }
 0x975   :  { %4074 = vmatprep.subr.bf16.mxu0 %v4277_v54 }
 0x978   :  { %4076 = vmatpush3.bf16.msra.mxu0 %v4075_v56  ;;  %v3154_v56 = vld [vmem:[%s5556_s5 + $0xa] ss:$0 sm:$0xff] }
 0x979   :  { %4077 = vmatprep.subr.bf16.mxu0 %v4277_v54 }
 0x97c   :  { %4079 = vmatpush3.bf16.msra.mxu0 %v4078_v62  ;;  %v3173_v62 = vld [vmem:[%s5563_s12 + $0x108] sm:$0xff] }
 0x97d   :  { %3700 = vmatprep.subr.mxu0 %v4271_v13  ;;  %v4105_v1 = vpack.c.bf16 %v3173_v62, %v3172_v60  ;;  %v3196_v60 = vld [vmem:[%s5563_s12 + $0x140] sm:$0xff]  ;;  %v3197_v62 = vld [vmem:[%s5563_s12 + $0x148] sm:$0xff] }
 0xa42   :  { %v1541_v30 = vpop.f32.mrb[10].mxu0 }
 0xa43   :  { %v1542_v31 = vadd.f32 %v3125_v29, %v1541_v30  ;;  %v3656_v32 = vpop.f32.mrb[11].mxu0  ;;  %v3162_v29 = vld [vmem:[%s5561_s10 + $0x108] sm:$0xff]  ;;  %v3163_v30 = vld [vmem:[%s5561_s10 + $0x110] sm:$0xff] }
 0xa44   :  { %v3164_v32 = vld [vmem:[%s5561_s10 + $0x118] sm:$0xff] }
 0xa45   :  { %4218 = vtanh.f32 %v1542_v31  ;;  %v4096_v35 = vpack.c.bf16 %v3164_v32, %v3163_v30 }
 0xa4f   :  { %v5070_v33 = vpop.eup %4218 }
 0xa50   :  { %v1546_v34 = vmul.f32 1.442695, %v5070_v33 }
 0xa52   :  { %4220 = vpow2.f32 %v1546_v34  ;;  %v3149_v34 = vld [vmem:[%s5564_s13 + $0x3] ss:$0 sm:$0xff] }
 0xa5c   :  { %v4221_v36 = vpop.eup %4220 }
 0xa5d   :  { %1549 = vrot.lane.b32.xlu1 %v4221_v36, %s4278_s7 }
 0xa61   :  { %1564 = vrot.lane.b32.xlu1 %v571_v11, %s4279_s19 }
 0xa65   :  { %1863 = vrot.lane.b32.xlu1 %v3156_v37, %s4278_s7  ;;  %v3165_v37 = vld [vmem:[%s5561_s10 + $0x120] sm:$0xff] }
 0xa66   :  { %v4099_v42 = vpack.c.bf16 %v3166_v39, %v3165_v37  ;;  %v3187_v37 = vld [vmem:[%s5561_s10 + $0x150] sm:$0xff] }
 0xacf   :  { %v1550_v57 = vpop.permute.xlu1 %1549 }
 0xad0   :  { %v1552_v58 = vmul.f32 %v1550_v57, %v1283_v55 }
 0xad2   :  { %v5104_v44 = vadd.f32 %v1552_v58, %v1542_v31  ;;  %v4093_v31 = vpack.c.bf16 %v3162_v29, %v3161_v28 }
 0xad3   :  { %v1565_v8 = vpop.permute.xlu1 %1564 }
 0xad4   :  { %1561 = vrot.lane.b32.xlu0 %v5104_v44, %s4280_s30 }
 0xb46   :  { %v1562_v50 = vpop.permute.xlu0 %1561 }
 0xb47   :  { %3660 = vmatmul.mubr.msk.f32.vlgmr.msra.gmra.mrb[16].mxu1 %vm693_vm11, %v1562_v50  ;;  %v3168_v50 = vld [vmem:[%s5561_s10 + $0x138] sm:$0xff] }
 0xb48   :  { %3697 = vmatprep.mubr.msk.f32.mxu1 %vm4276_vm6, %v4271_v13  ;;  %4082 = vmatpush3.bf16.msra.mxu1 %v4081_v3  ;;  %v4108_v3 = vpack.c.bf16 %v3175_v2, %v3174_v0  ;;  %v3198_v0 = vld [vmem:[%s5563_s12 + $0x150] sm:$0xff]  ;;  %v3199_v2 = vld [vmem:[%s5563_s12 + $0x158] sm:$0xff] }
 0xb49   :  { %4083 = vmatprep.subr.bf16.mxu1 %v4277_v54 }
 0xb4c   :  { %4085 = vmatpush3.bf16.msra.mxu1 %v4084_v5  ;;  %v3177_v5 = vld [vmem:[%s5563_s12 + $0x128] sm:$0xff] }
 0xb4d   :  { %4086 = vmatprep.subr.bf16.mxu1 %v4277_v54  ;;  %v4111_v48 = vpack.c.bf16 %v3177_v5, %v3176_v4  ;;  %v3200_v4 = vld [vmem:[%s5563_s12 + $0x160] sm:$0xff]  ;;  %v3201_v5 = vld [vmem:[%s5563_s12 + $0x168] sm:$0xff] }
 0xb50   :  { %4088 = vmatpush3.bf16.msra.mxu1 %v4087_v7  ;;  %v476_v7 = vrot.slane %v4851_v12, %v475_v6  ;;  %v3179_v12 = vld [vmem:[%s5563_s12 + $0x138] sm:$0xff] }
 0xb51   :  { %4089 = vmatprep.subr.bf16.mxu1 %v4277_v54 }
 0xb54   :  { %4091 = vmatpush3.bf16.msra.mxu1 %v4090_v21 }
 0xb55   :  { %4092 = vmatprep.subr.bf16.mxu1 %v4277_v54 }
 0xc1a   :  { %v1635_v9 = vpop.f32.mrb[16].mxu1 }
 0xc1b   :  { %v1636_v11 = vadd.f32 %v1635_v9, %v1565_v8  ;;  %v3661_v15 = vpop.f32.mrb[17].mxu1  ;;  %v640_v8 = vadd.f32 %v4854_v16, %v476_v7  ;;  %v4114_v16 = vpack.c.bf16 %v3179_v12, %v3178_v14  ;;  %v3194_v12 = vld [vmem:[%s5562_s11 + $0x5] ss:$0 sm:$0xff] }
 0xc1d   :  { %vm1639_vm3 = vcmp.gt.f32.partialorder %v1636_v11, 0.0  ;;  %v1640_v18 = vmul.f32 0.01, %v1636_v11 }
 0xc1f   :  { %v1641_v19 = vsel %vm1639_vm3, %v1636_v11, %v1640_v18 }
 0xc20   :  { %3679 = vmatmul.mubr.msk.f32.vlgmr.msra.gmra.mrb[12].mxu0 %vm785_vm13, %v1641_v19 }
 0xc21   :  { %3702 = vmatprep.mubr.msk.f32.mxu0 %vm4276_vm6, %v4271_v13  ;;  %3701 = vmatpush3.msra.mxu0 %v3159_v27 }
 0xc22   :  { %4104 = vmatprep.subr.bf16.mxu0 %v4277_v54 }
 0xcf3   :  { %v1728_v10 = vpop.f32.mrb[12].mxu0 }
 0xcf4   :  { %v1729_v23 = vadd.f32 %v3138_v22, %v1728_v10  ;;  %v3680_v24 = vpop.f32.mrb[13].mxu0 }
 0xcf6   :  { %vm1732_vm4 = vcmp.gt.f32.partialorder %v1729_v23, 0.0  ;;  %v1733_v25 = vmul.f32 0.01, %v1729_v23 }
 0xcf8   :  { %v1734_v26 = vsel %vm1732_vm4, %v1729_v23, %v1733_v25  ;;  %v3181_v25 = vld [vmem:[%s5564_s13 + $0x4] ss:$0 sm:$0xff] }
 0xcf9   :  { %3698 = vmatmul.mubr.msk.f32.vlgmr.msra.gmra.mrb[18].mxu1 %vm785_vm13, %v1734_v26 }
 0xcfa   :  { %3721 = vmatprep.mubr.msk.f32.mxu1 %vm4276_vm6, %v4271_v13  ;;  %4094 = vmatpush3.bf16.msra.mxu1 %v4093_v31  ;;  %v3183_v31 = vld [vmem:[%s5560_s9 + $0x28] sm:$0xff] }
 0xcfb   :  { %4095 = vmatprep.subr.bf16.mxu1 %v4277_v54 }
 0xcfe   :  { %4097 = vmatpush3.bf16.msra.mxu1 %v4096_v35  ;;  %v3185_v35 = vld [vmem:[%s5561_s10 + $0x140] sm:$0xff] }
 0xcff   :  { %4098 = vmatprep.subr.bf16.mxu1 %v4277_v54 }
 0xd02   :  { %4100 = vmatpush3.bf16.msra.mxu1 %v4099_v42 }
 0xd03   :  { %4101 = vmatprep.subr.bf16.mxu1 %v4277_v54 }
 0xdcc   :  { %v1821_v36 = vpop.f32.mrb[18].mxu1 }
 0xdcd   :  { %v1822_v40 = vadd.f32 %v3149_v34, %v1821_v36  ;;  %v3699_v41 = vpop.f32.mrb[19].mxu1  ;;  %v3212_v34 = vld [vmem:[%s5556_s5 + $0xd] ss:$0 sm:$0xff] }
 0xdce   :  { %v3186_v36 = vld [vmem:[%s5561_s10 + $0x148] sm:$0xff]  ;;  %v1864_v41 = vpop.permute.xlu1 %1863 }
 0xdcf   :  { %1830 = vrot.lane.b32.xlu0 %v1822_v40, %s4280_s30  ;;  %4222 = vtanh.f32 %v1822_v40  ;;  %v4117_v39 = vpack.c.bf16 %v3186_v36, %v3185_v35  ;;  %v3188_v40 = vld [vmem:[%s5561_s10 + $0x158] sm:$0xff]  ;;  %v3222_v35 = vld [vmem:[%s5561_s10 + $0x1a8] sm:$0xff] }
 0xdd0   :  { %v4120_v42 = vpack.c.bf16 %v3188_v40, %v3187_v37  ;;  %v3214_v40 = vld [vmem:[%s5556_s5 + $0xf] ss:$0 sm:$0xff] }
 0xdd3   :  { %1874 = vrot.lane.b32.xlu0 %v3158_v43, %s4278_s7 }
 0xdd9   :  { %v5189_v45 = vpop.eup %4222 }
 0xdda   :  { %v1826_v46 = vmul.f32 1.442695, %v5189_v45 }
 0xddc   :  { %4224 = vpow2.f32 %v1826_v46  ;;  %v3189_v46 = vld [vmem:[%s5561_s10 + $0x160] sm:$0xff] }
 0xde6   :  { %v4225_v47 = vpop.eup %4224 }
 0xde7   :  { %v1828_v51 = vmul.f32 %v4225_v47, %v5014_v59  ;;  %v3167_v59 = vld [vmem:[%s5561_s10 + $0x130] sm:$0xff]  ;;  %v3190_v47 = vld [vmem:[%s5561_s10 + $0x168] sm:$0xff] }
 0xde8   :  { %v4102_v61 = vpack.c.bf16 %v3168_v50, %v3167_v59  ;;  %v3192_v50 = vld [vmem:[%s5561_s10 + $0x178] sm:$0xff] }
 0xdea   :  { %4103 = vmatpush3.bf16.msra.mxu1 %v4102_v61 }
 0xdeb   :  { %3743 = vmatprep.subr.mxu1 %v4271_v13 }
 0xe41   :  { %v1831_v53 = vpop.permute.xlu0 %1830 }
 0xe42   :  { %v1833_v55 = vadd.f32 %v1831_v53, %v1828_v51  ;;  %v1866_v51 = vadd.f32 %v1864_v41, %v5104_v44  ;;  %v4123_v53 = vpack.c.bf16 %v3190_v47, %v3189_v46  ;;  %v3191_v44 = vld [vmem:[%s5561_s10 + $0x170] sm:$0xff]  ;;  %v3208_v47 = vld [vmem:[%s5556_s5 + $0xc] ss:$0 sm:$0xff] }
 0xe43   :  { %v4126_v61 = vpack.c.bf16 %v3192_v50, %v3191_v44  ;;  %v3228_v50 = vld [vmem:[%s5563_s12 + $0x180] sm:$0xff] }
 0xe44   :  { %v1846_v57 = vadd.f32 %v3152_v52, %v1833_v55 }
 0xe45   :  { %v1875_v43 = vpop.permute.xlu0 %1874 }
 0xe46   :  { %v5199_v58 = vmul.f32 %v3154_v56, %v1846_v57  ;;  %v1877_v52 = vmul.f32 %v1875_v43, %v1866_v51 }
 0xe48   :  { %3703 = vmatmul.mubr.msk.f32.vlgmr.msra.gmra.mrb[14].mxu0 %vm693_vm11, %v5199_v58 }
 0xe49   :  { %3740 = vmatprep.mubr.msk.f32.mxu0 %vm4276_vm6, %v4271_v13  ;;  %4106 = vmatpush3.bf16.msra.mxu0 %v4105_v1  ;;  %v4129_v1 = vpack.c.bf16 %v3197_v62, %v3196_v60  ;;  %v3230_v60 = vld [vmem:[%s5563_s12 + $0x190] sm:$0xff] }
 0xe4a   :  { %4107 = vmatprep.subr.bf16.mxu0 %v4277_v54 }
 0xe4d   :  { %4109 = vmatpush3.bf16.msra.mxu0 %v4108_v3  ;;  %v4132_v3 = vpack.c.bf16 %v3199_v2, %v3198_v0  ;;  %v3231_v0 = vld [vmem:[%s5563_s12 + $0x198] sm:$0xff]  ;;  %v3232_v2 = vld [vmem:[%s5563_s12 + $0x1a0] sm:$0xff] }
 0xe4e   :  { %4110 = vmatprep.subr.bf16.mxu0 %v4277_v54 }
 0xe51   :  { %4112 = vmatpush3.bf16.msra.mxu0 %v4111_v48  ;;  %v4135_v48 = vpack.c.bf16 %v3201_v5, %v3200_v4  ;;  %v479_v5 = vsub.s32 3, %v4484_v63  ;;  %v3234_v63 = vld [vmem:[%s5563_s12 + $0x1b0] sm:$0xff] }
 0xe52   :  { %4113 = vmatprep.subr.bf16.mxu0 %v4277_v54 }
 0xe55   :  { %4115 = vmatpush3.bf16.msra.mxu0 %v4114_v16 }
 0xe56   :  { %4116 = vmatprep.subr.bf16.mxu0 %v4277_v54 }
 0xf1b   :  { %v1949_v9 = vpop.f32.mrb[14].mxu0 }
 0xf1c   :  { %v1950_v11 = vadd.f32 %v1949_v9, %v640_v8  ;;  %v3704_v15 = vpop.f32.mrb[15].mxu0 }
 0xf1e   :  { %vm1953_vm5 = vcmp.gt.f32.partialorder %v1950_v11, 0.0  ;;  %v1954_v18 = vmul.f32 0.01, %v1950_v11 }
 0xf20   :  { %v1955_v19 = vsel %vm1953_vm5, %v1950_v11, %v1954_v18  ;;  %v3202_v18 = vld [vmem:[%s5563_s12 + $0x170] sm:$0xff] }
 0xf21   :  { %3722 = vmatmul.mubr.msk.f32.vlgmr.msra.gmra.mrb[20].mxu1 %vm785_vm13, %v1955_v19  ;;  %v3203_v19 = vld [vmem:[%s5563_s12 + $0x178] sm:$0xff] }
 0xf22   :  { %3745 = vmatprep.mubr.msk.f32.mxu1 %vm4276_vm6, %v4271_v13  ;;  %3744 = vmatpush3.msra.mxu1 %v3183_v31  ;;  %v4138_v14 = vpack.c.bf16 %v3203_v19, %v3202_v18  ;;  %v3235_v19 = vld [vmem:[%s5563_s12 + $0x1b8] sm:$0xff] }
 0xf23   :  { %4128 = vmatprep.subr.bf16.mxu1 %v4277_v54 }
 0xff4   :  { %v2042_v21 = vpop.f32.mrb[20].mxu1 }
 0xff5   :  { %v2043_v22 = vadd.f32 %v3170_v20, %v2042_v21  ;;  %v3723_v10 = vpop.f32.mrb[21].mxu1 }
 0xff7   :  { %vm2046_vm7 = vcmp.gt.f32.partialorder %v2043_v22, 0.0  ;;  %v2047_v23 = vmul.f32 0.01, %v2043_v22 }
 0xff9   :  { %v2048_v24 = vsel %vm2046_vm7, %v2043_v22, %v2047_v23  ;;  %v3215_v23 = vld [vmem:[%s5560_s9 + $0x30] sm:$0xff] }
 0xffa   :  { %3741 = vmatmul.mubr.msk.f32.vlgmr.msra.gmra.mrb[16].mxu0 %vm785_vm13, %v2048_v24  ;;  %v3217_v24 = vld [vmem:[%s5561_s10 + $0x180] sm:$0xff] }
 0xffb   :  { %3764 = vmatprep.mubr.msk.f32.mxu0 %vm4276_vm6, %v4271_v13  ;;  %4118 = vmatpush3.bf16.msra.mxu0 %v4117_v39 }
 0xffc   :  { %4119 = vmatprep.subr.bf16.mxu0 %v4277_v54 }
 0xfff   :  { %4121 = vmatpush3.bf16.msra.mxu0 %v4120_v42 }
0x1000   :  { %4122 = vmatprep.subr.bf16.mxu0 %v4277_v54 }
0x1003   :  { %4124 = vmatpush3.bf16.msra.mxu0 %v4123_v53  ;;  %v3210_v53 = vld [vmem:[%s5556_s5 + $0xe] ss:$0 sm:$0xff] }
0x1004   :  { %4125 = vmatprep.subr.bf16.mxu0 %v4277_v54 }
0x1007   :  { %4127 = vmatpush3.bf16.msra.mxu0 %v4126_v61  ;;  %v3229_v61 = vld [vmem:[%s5563_s12 + $0x188] sm:$0xff] }
0x1008   :  { %3786 = vmatprep.subr.mxu0 %v4271_v13  ;;  %v4153_v62 = vpack.c.bf16 %v3229_v61, %v3228_v50  ;;  %v3252_v61 = vld [vmem:[%s5563_s12 + $0x1c0] sm:$0xff] }
0x10cd   :  { %v2135_v26 = vpop.f32.mrb[16].mxu0 }
0x10ce   :  { %v2136_v27 = vadd.f32 %v3181_v25, %v2135_v26  ;;  %v3742_v28 = vpop.f32.mrb[17].mxu0  ;;  %v3218_v25 = vld [vmem:[%s5561_s10 + $0x188] sm:$0xff]  ;;  %v3219_v26 = vld [vmem:[%s5561_s10 + $0x190] sm:$0xff] }
0x10cf   :  { %v3220_v28 = vld [vmem:[%s5561_s10 + $0x198] sm:$0xff] }
0x10d0   :  { %4226 = vtanh.f32 %v2136_v27  ;;  %v4144_v31 = vpack.c.bf16 %v3220_v28, %v3219_v26 }
0x10da   :  { %v5255_v29 = vpop.eup %4226 }
0x10db   :  { %v2140_v30 = vmul.f32 1.442695, %v5255_v29 }
0x10dd   :  { %4228 = vpow2.f32 %v2140_v30  ;;  %v3205_v30 = vld [vmem:[%s5564_s13 + $0x5] ss:$0 sm:$0xff] }
0x10e7   :  { %v4229_v32 = vpop.eup %4228 }
0x10e8   :  { %2143 = vrot.lane.b32.xlu1 %v4229_v32, %s4278_s7 }
0x10ec   :  { %2158 = vrot.lane.b32.xlu1 %v640_v8, %s4279_s19 }
0x10f0   :  { %2457 = vrot.lane.b32.xlu1 %v3212_v34, %s4278_s7  ;;  %v3221_v34 = vld [vmem:[%s5561_s10 + $0x1a0] sm:$0xff] }
0x10f1   :  { %v4147_v39 = vpack.c.bf16 %v3222_v35, %v3221_v34  ;;  %v3239_v34 = vld [vmem:[%s5560_s9 + $0x38] sm:$0xff] }
0x115a   :  { %v2144_v55 = vpop.permute.xlu1 %2143 }
0x115b   :  { %v2146_v56 = vmul.f32 %v2144_v55, %v1877_v52 }
0x115d   :  { %v5289_v57 = vadd.f32 %v2146_v56, %v2136_v27  ;;  %v4141_v27 = vpack.c.bf16 %v3218_v25, %v3217_v24 }
0x115e   :  { %v2159_v6 = vpop.permute.xlu1 %2158 }
0x115f   :  { %2155 = vrot.lane.b32.xlu0 %v5289_v57, %s4280_s30 }
0x1162   :  { %v2458_v35 = vpop.permute.xlu1 %2457 }
0x11d1   :  { %v2156_v59 = vpop.permute.xlu0 %2155 }
0x11d2   :  { %3746 = vmatmul.mubr.msk.f32.vlgmr.msra.gmra.mrb[22].mxu1 %vm693_vm11, %v2156_v59  ;;  %v3224_v59 = vld [vmem:[%s5561_s10 + $0x1b8] sm:$0xff] }
0x11d3   :  { %3783 = vmatprep.mubr.msk.f32.mxu1 %vm4276_vm6, %v4271_v13  ;;  %4130 = vmatpush3.bf16.msra.mxu1 %v4129_v1  ;;  %v4156_v1 = vpack.c.bf16 %v3231_v0, %v3230_v60  ;;  %v3253_v60 = vld [vmem:[%s5563_s12 + $0x1c8] sm:$0xff]  ;;  %v3255_v0 = vld [vmem:[%s5563_s12 + $0x1d8] sm:$0xff] }
0x11d4   :  { %4131 = vmatprep.subr.bf16.mxu1 %v4277_v54 }
0x11d7   :  { %4133 = vmatpush3.bf16.msra.mxu1 %v4132_v3  ;;  %v3233_v3 = vld [vmem:[%s5563_s12 + $0x1a8] sm:$0xff] }
0x11d8   :  { %4134 = vmatprep.subr.bf16.mxu1 %v4277_v54  ;;  %v4159_v4 = vpack.c.bf16 %v3233_v3, %v3232_v2  ;;  %v3256_v2 = vld [vmem:[%s5563_s12 + $0x1e0] sm:$0xff]  ;;  %v3257_v3 = vld [vmem:[%s5563_s12 + $0x1e8] sm:$0xff] }
0x11db   :  { %4136 = vmatpush3.bf16.msra.mxu1 %v4135_v48  ;;  %v4242_v48 = vld [vmem:[%s5559_s8] sm:$0xf] }
0x11dc   :  { %4137 = vmatprep.subr.bf16.mxu1 %v4277_v54 }
0x11df   :  { %4139 = vmatpush3.bf16.msra.mxu1 %v4138_v14  ;;  %v3226_v14 = vld [vmem:[%s5562_s11 + $0x6] ss:$0 sm:$0xff] }
0x11e0   :  { %4140 = vmatprep.subr.bf16.mxu1 %v4277_v54 }
0x12a5   :  { %v2229_v7 = vpop.f32.mrb[22].mxu1 }
0x12a6   :  { %v2230_v8 = vadd.f32 %v2229_v7, %v2159_v6  ;;  %v3747_v9 = vpop.f32.mrb[23].mxu1  ;;  %v480_v6 = vrot.slane %v4242_v48, %v479_v5 }
0x12a8   :  { %vm2233_vm8 = vcmp.gt.f32.partialorder %v2230_v8, 0.0  ;;  %v2234_v11 = vmul.f32 0.01, %v2230_v8  ;;  %v642_v7 = vadd.f32 %v4856_v17, %v480_v6  ;;  %v4162_v17 = vpack.c.bf16 %v3235_v19, %v3234_v63 }
0x12aa   :  { %v2235_v15 = vsel %vm2233_vm8, %v2230_v8, %v2234_v11 }
0x12ab   :  { %3765 = vmatmul.mubr.msk.f32.vlgmr.msra.gmra.mrb[18].mxu0 %vm785_vm13, %v2235_v15 }
0x12ac   :  { %3788 = vmatprep.mubr.msk.f32.mxu0 %vm4276_vm6, %v4271_v13  ;;  %3787 = vmatpush3.msra.mxu0 %v3215_v23 }
0x12ad   :  { %4152 = vmatprep.subr.bf16.mxu0 %v4277_v54 }
0x137e   :  { %v2322_v16 = vpop.f32.mrb[18].mxu0 }
0x137f   :  { %v2323_v20 = vadd.f32 %v3194_v12, %v2322_v16  ;;  %v3766_v21 = vpop.f32.mrb[19].mxu0 }
0x1381   :  { %vm2326_vm9 = vcmp.gt.f32.partialorder %v2323_v20, 0.0  ;;  %v2327_v22 = vmul.f32 0.01, %v2323_v20 }
0x1383   :  { %v2328_v10 = vsel %vm2326_vm9, %v2323_v20, %v2327_v22 }
0x1384   :  { %3784 = vmatmul.mubr.msk.f32.vlgmr.msra.gmra.mrb[24].mxu1 %vm785_vm13, %v2328_v10  ;;  %v3237_v10 = vld [vmem:[%s5564_s13 + $0x6] ss:$0 sm:$0xff] }
0x1385   :  { %3807 = vmatprep.mubr.msk.f32.mxu1 %vm4276_vm6, %v4271_v13  ;;  %4142 = vmatpush3.bf16.msra.mxu1 %v4141_v27 }
0x1386   :  { %4143 = vmatprep.subr.bf16.mxu1 %v4277_v54 }
0x1389   :  { %4145 = vmatpush3.bf16.msra.mxu1 %v4144_v31  ;;  %v2148_v31 = vsel %vm959_vm14, %v5255_v29, 0.0  ;;  %v960_v29 = vsel %vm959_vm14, %v4885_v38, 0.0  ;;  %v3242_v38 = vld [vmem:[%s5561_s10 + $0x1c8] sm:$0xff] }
0x138a   :  { %4146 = vmatprep.subr.bf16.mxu1 %v4277_v54 }
0x138d   :  { %4148 = vmatpush3.bf16.msra.mxu1 %v4147_v39 }
0x138e   :  { %4149 = vmatprep.subr.bf16.mxu1 %v4277_v54 }
0x1457   :  { %v2415_v32 = vpop.f32.mrb[24].mxu1 }
0x1458   :  { %v2416_v36 = vadd.f32 %v3205_v30, %v2415_v32  ;;  %v3785_v37 = vpop.f32.mrb[25].mxu1  ;;  %v1240_v30 = vsel %vm959_vm14, %v5004_v49, 0.0 }
0x1459   :  { %v2460_v37 = vadd.f32 %v2458_v35, %v5289_v57 }
0x145a   :  { %2424 = vrot.lane.b32.xlu0 %v2416_v36, %s4280_s30  ;;  %4230 = vtanh.f32 %v2416_v36 }
0x145e   :  { %2468 = vrot.lane.b32.xlu0 %v3214_v40, %s4278_s7 }
0x1464   :  { %v5374_v41 = vpop.eup %4230 }
0x1465   :  { %v2420_v42 = vmul.f32 1.442695, %v5374_v41  ;;  %v2428_v57 = vsel %vm959_vm14, %v5374_v41, 0.0 }
0x1467   :  { %4232 = vpow2.f32 %v2420_v42 }
0x1471   :  { %v4233_v43 = vpop.eup %4232 }
0x1472   :  { %v2422_v46 = vmul.f32 %v4233_v43, %v5199_v58  ;;  %v3223_v58 = vld [vmem:[%s5561_s10 + $0x1b0] sm:$0xff]  ;;  %v1554_v43 = vsel %vm959_vm14, %v5070_v33, 0.0 }
0x1473   :  { %v4150_v44 = vpack.c.bf16 %v3224_v59, %v3223_v58  ;;  %v3243_v33 = vld [vmem:[%s5561_s10 + $0x1d0] sm:$0xff] }
0x1474   :  { %v3247_v59 = vld [vmem:[%s5561_s10 + $0x1f0] sm:$0xff] }
0x1475   :  { %4151 = vmatpush3.bf16.msra.mxu1 %v4150_v44  ;;  %v3248_v44 = vld [vmem:[%s5561_s10 + $0x1f8] sm:$0xff] }
0x1476   :  { %3829 = vmatprep.subr.mxu1 %v4271_v13  ;;  %v4174_v50 = vpack.c.bf16 %v3248_v44, %v3247_v59 }
0x14cc   :  { %v2425_v51 = vpop.permute.xlu0 %2424 }
0x14cd   :  { %v2427_v52 = vadd.f32 %v2425_v51, %v2422_v46  ;;  %v1834_v46 = vsel %vm959_vm14, %v5189_v45, 0.0  ;;  %v3244_v45 = vld [vmem:[%s5561_s10 + $0x1d8] sm:$0xff] }
0x14ce   :  { %v4168_v41 = vpack.c.bf16 %v3244_v45, %v3243_v33 }
0x14cf   :  { %v2440_v55 = vadd.f32 %v3208_v47, %v2427_v52  ;;  %v3241_v47 = vld [vmem:[%s5561_s10 + $0x1c0] sm:$0xff] }
0x14d0   :  { %v2469_v36 = vpop.permute.xlu0 %2468  ;;  %v4165_v51 = vpack.c.bf16 %v3242_v38, %v3241_v47  ;;  %v3245_v52 = vld [vmem:[%s5561_s10 + $0x1e0] sm:$0xff] }
0x14d1   :  { %v5384_v56 = vmul.f32 %v3210_v53, %v2440_v55  ;;  %v2471_v49 = vmul.f32 %v2469_v36, %v2460_v37  ;;  %v3246_v53 = vld [vmem:[%s5561_s10 + $0x1e8] sm:$0xff] }
0x14d2   :  { %v4171_v55 = vpack.c.bf16 %v3246_v53, %v3245_v52 }
0x14d3   :  { %3789 = vmatmul.mubr.msk.f32.vlgmr.msra.gmra.mrb[20].mxu0 %vm693_vm11, %v5384_v56 }
0x14d4   :  { %3826 = vmatprep.mubr.msk.f32.mxu0 %vm4276_vm6, %v4271_v13  ;;  %4154 = vmatpush3.bf16.msra.mxu0 %v4153_v62  ;;  %v4177_v62 = vpack.c.bf16 %v3253_v60, %v3252_v61 }
0x14d5   :  { %4155 = vmatprep.subr.bf16.mxu0 %v4277_v54 }
0x14d8   :  { %4157 = vmatpush3.bf16.msra.mxu0 %v4156_v1 }
0x14d9   :  { %4158 = vmatprep.subr.bf16.mxu0 %v4277_v54 }
0x14dc   :  { %4160 = vmatpush3.bf16.msra.mxu0 %v4159_v4  ;;  %v4183_v4 = vpack.c.bf16 %v3257_v3, %v3256_v2 }
0x14dd   :  { %4161 = vmatprep.subr.bf16.mxu0 %v4277_v54 }
0x14e0   :  { %4163 = vmatpush3.bf16.msra.mxu0 %v4162_v17 }
0x14e1   :  { %4164 = vmatprep.subr.bf16.mxu0 %v4277_v54 }
0x15a6   :  { %v2543_v8 = vpop.f32.mrb[20].mxu0 }
0x15a7   :  { %v2544_v9 = vadd.f32 %v2543_v8, %v642_v7  ;;  %v3790_v11 = vpop.f32.mrb[21].mxu0 }
0x15a8   :  { %v3258_v11 = vld [vmem:[%s5563_s12 + $0x1f0] sm:$0xff] }
0x15a9   :  { %vm2547_vm10 = vcmp.gt.f32.partialorder %v2544_v9, 0.0  ;;  %v2548_v15 = vmul.f32 0.01, %v2544_v9 }
0x15ab   :  { %v2549_v18 = vsel %vm2547_vm10, %v2544_v9, %v2548_v15  ;;  %v3259_v15 = vld [vmem:[%s5563_s12 + $0x1f8] sm:$0xff] }
0x15ac   :  { %3808 = vmatmul.mubr.msk.f32.vlgmr.msra.gmra.mrb[26].mxu1 %vm785_vm13, %v2549_v18  ;;  %v4186_v18 = vpack.c.bf16 %v3259_v15, %v3258_v11 }
0x15ad   :  { %3831 = vmatprep.mubr.msk.f32.mxu1 %vm4276_vm6, %v4271_v13  ;;  %3830 = vmatpush3.msra.mxu1 %v3239_v34 }
0x15ae   :  { %4176 = vmatprep.subr.bf16.mxu1 %v4277_v54 }
0x167f   :  { %v2636_v12 = vpop.f32.mrb[26].mxu1 }
0x1680   :  { %v2637_v16 = vadd.f32 %v3226_v14, %v2636_v12  ;;  %v3809_v20 = vpop.f32.mrb[27].mxu1 }
0x1682   :  { %vm2640_vm12 = vcmp.gt.f32.partialorder %v2637_v16, 0.0  ;;  %v2641_v21 = vmul.f32 0.01, %v2637_v16 }
0x1684   :  { %v2642_v22 = vsel %vm2640_vm12, %v2637_v16, %v2641_v21  ;;  %v3261_v16 = vld [vmem:[%s5564_s13 + $0x7] ss:$0 sm:$0xff] }
0x1685   :  { %3827 = vmatmul.mubr.msk.f32.vlgmr.msra.gmra.mrb[22].mxu0 %vm785_vm13, %v2642_v22 }
0x1686   :  { %3850 = vmatprep.mubr.msk.f32.mxu0 %vm4276_vm6, %v4271_v13  ;;  %4166 = vmatpush3.bf16.msra.mxu0 %v4165_v51 }
0x1687   :  { %4167 = vmatprep.subr.bf16.mxu0 %v4277_v54 }
0x168a   :  { %4169 = vmatpush3.bf16.msra.mxu0 %v4168_v41 }
0x168b   :  { %4170 = vmatprep.subr.bf16.mxu0 %v4277_v54 }
0x168e   :  { %4172 = vmatpush3.bf16.msra.mxu0 %v4171_v55 }
0x168f   :  { %4173 = vmatprep.subr.bf16.mxu0 %v4277_v54 }
0x1692   :  { %4175 = vmatpush3.bf16.msra.mxu0 %v4174_v50 }
0x1758   :  { %v2729_v23 = vpop.f32.mrb[22].mxu0 }
0x1759   :  { %v2730_v24 = vadd.f32 %v3237_v10, %v2729_v23  ;;  %v3828_v25 = vpop.f32.mrb[23].mxu0 }
0x175b   :  { %4234 = vtanh.f32 %v2730_v24 }
0x1765   :  { %v4235_v26 = vpop.eup %4234 }
0x1766   :  { %v2734_v27 = vmul.f32 1.442695, %v4235_v26  ;;  %v2742_v32 = vsel %vm959_vm14, %v4235_v26, 0.0 }
0x1768   :  { %4236 = vpow2.f32 %v2734_v27 }
0x1772   :  { %v4237_v28 = vpop.eup %4236 }
0x1773   :  { %2737 = vrot.lane.b32.xlu1 %v4237_v28, %s4278_s7 }
0x1777   :  { %2752 = vrot.lane.b32.xlu1 %v642_v7, %s4279_s19 }
0x179b   :  { %1241 = vadd.xlane.f32.xlu1 %v1240_v30 }
0x179f   :  { %2149 = vadd.xlane.f32.xlu1 %v2148_v31 }
0x17a3   :  { %2743 = vadd.xlane.f32.xlu1 %v2742_v32 }
0x17e5   :  { %v2738_v39 = vpop.permute.xlu1 %2737 }
0x17e6   :  { %v2740_v40 = vmul.f32 %v2738_v39, %v2471_v49 }
0x17e8   :  { %v5454_v42 = vadd.f32 %v2740_v40, %v2730_v24 }
0x17e9   :  { %v2753_v5 = vpop.permute.xlu1 %2752 }
0x17ea   :  { %2749 = vrot.lane.b32.xlu0 %v5454_v42, %s4280_s30 }
0x1809   :  { %961 = vadd.xlane.f32.xlu0 %v960_v29 }
0x180d   :  { %1555 = vadd.xlane.f32.xlu0 %v1554_v43 }
0x1811   :  { %1835 = vadd.xlane.f32.xlu0 %v1834_v46 }
0x1815   :  { %2429 = vadd.xlane.f32.xlu0 %v2428_v57 }
0x185c   :  { %v2750_v58 = vpop.permute.xlu0 %2749 }
0x185d   :  { %3832 = vmatmul.mubr.msk.f32.vlgmr.msra.gmra.mrb[28].mxu1 %vm693_vm11, %v2750_v58 }
0x185e   :  { %3869 = vmatprep.mubr.msk.f32.mxu1 %vm4276_vm6, %v4271_v13  ;;  %v3254_v13 = vld [vmem:[%s5563_s12 + $0x1d0] sm:$0xff]  ;;  %4178 = vmatpush3.bf16.msra.mxu1 %v4177_v62 }
0x185f   :  { %v4180_v1 = vpack.c.bf16 %v3255_v0, %v3254_v13  ;;  %4179 = vmatprep.subr.bf16.mxu1 %v4277_v54 }
0x1862   :  { %4181 = vmatpush3.bf16.msra.mxu1 %v4180_v1 }
0x1863   :  { %4182 = vmatprep.subr.bf16.mxu1 %v4277_v54 }
0x1866   :  { %4184 = vmatpush3.bf16.msra.mxu1 %v4183_v4 }
0x1867   :  { %4185 = vmatprep.subr.bf16.mxu1 %v4277_v54  ;;  %v3250_v54 = vld [vmem:[%s5562_s11 + $0x7] ss:$0 sm:$0xff]  ;;  %s4281_s11 = smov [#allocation3]  }
0x1868   :  { %s3037_s12 = sshll.u32 %s4281_s11, 4  ;;  %s3038_s12 = int_to_ptr.vmem [resolvable:$true] %s3037_s12 }
0x1869   :  { %s4243_s13 = scalar_lea.vmem %s3038_s12, 32  ;;  %p4248_p1 = scmp.lt.s32.totalorder %s3038_s12, %s3038_s12 }
0x186a   :  { %4187 = vmatpush3.bf16.msra.mxu1 %v4186_v18  ;;  %p4244_p0 = scmp.ne.s32.totalorder %s3038_s12, %s4243_s13  ;;  %p4249_p2 = scmp.lt.s32.totalorder %s4243_s13, %s4243_s13 }
0x186c   :  { %p4250_p3 = por %p4249_p2, %p4248_p1 }
0x186e   :  { %p4251_p4 = pnand %p4250_p3, %p4244_p0 }
0x1896   :  { %v962_v24 = vpop.xlane.xlu0 %961 }
0x189a   :  { %v1556_v26 = vpop.xlane.xlu0 %1555 }
0x189e   :  { %v1836_v27 = vpop.xlane.xlu0 %1835 }
0x18a2   :  { %v2430_v30 = vpop.xlane.xlu0 %2429 }
0x1930   :  { %v2823_v48 = vpop.f32.mrb[28].mxu1 }
0x1931   :  { %v2824_v6 = vadd.f32 %v2823_v48, %v2753_v5  ;;  %v3833_v7 = vpop.f32.mrb[29].mxu1 }
0x1933   :  { %vm2827_vm6 = vcmp.gt.f32.partialorder %v2824_v6, 0.0  ;;  %v2828_v8 = vmul.f32 0.01, %v2824_v6 }
0x1935   :  { %v2829_v9 = vsel %vm2827_vm6, %v2824_v6, %v2828_v8 }
0x1936   :  { %3851 = vmatmul.mubr.msk.f32.vlgmr.msra.gmra.mrb[24].mxu0 %vm785_vm13, %v2829_v9 }
0x1a09   :  { %v2916_v63 = vpop.f32.mrb[24].mxu0 }
0x1a0a   :  { %v2917_v19 = vadd.f32 %v3250_v54, %v2916_v63  ;;  %v3852_v17 = vpop.f32.mrb[25].mxu0 }
0x1a0c   :  { %vm2920_vm15 = vcmp.gt.f32.partialorder %v2917_v19, 0.0  ;;  %v2921_v14 = vmul.f32 0.01, %v2917_v19 }
0x1a0e   :  { %v2922_v12 = vsel %vm2920_vm15, %v2917_v19, %v2921_v14 }
0x1a0f   :  { %3870 = vmatmul.mubr.msk.f32.vlgmr.msra.gmra.mrb[30].mxu1 %vm785_vm13, %v2922_v12  ;;  %vm3027_vm13 = vcmask 123904  }
0x1ae2   :  { %v3009_v20 = vpop.f32.mrb[30].mxu1 }
0x1ae3   :  { %v3010_v21 = vadd.f32 %v3261_v16, %v3009_v20  ;;  %v3871_v22 = vpop.f32.mrb[31].mxu1 }
0x1ae5   :  { %4238 = vtanh.f32 %v3010_v21  ;;  %3018 = vrot.lane.b32.xlu0 %v3010_v21, %s4280_s30 }
0x1aef   :  { %v4239_v10 = vpop.eup %4238 }
0x1af0   :  { %v3022_v23 = vsel %vm959_vm14, %v4239_v10, 0.0  ;;  %v3014_v25 = vmul.f32 1.442695, %v4239_v10 }
0x1af1   :  { %3023 = vadd.xlane.f32.xlu1 %v3022_v23 }
0x1af2   :  { %4240 = vpow2.f32 %v3014_v25 }
0x1afc   :  { %v4241_v28 = vpop.eup %4240 }
0x1afd   :  { %v3016_v31 = vmul.f32 %v4241_v28, %v5384_v56 }
0x1b57   :  { %v3019_v32 = vpop.permute.xlu0 %3018 }
0x1b58   :  { %v3021_v34 = vadd.f32 %v3019_v32, %v3016_v31 }
0x1b5a   :  { %v3026_v35 = vsel %vm693_vm11, %v3021_v34, %v5454_v42 }
0x1b5b   :  { %3028 = vst.msk [vmem:[#allocation3] sm:$0x3] %vm3027_vm13, %v3026_v35 }
0x1b5c   :  { %4254 = shalt.err (!%p4251_p4)
}
0x1b5d   :  { %s4255_s29 = scalar_lea.hbm %s5565_s14, 32 }
0x1b5e   :  { %p4256_p5 = scmp.ne.s32.totalorder %s5565_s14, %s4255_s29  ;;  %p4259_p6 = scmp.lt.u32.totalorder %s4255_s29, %s5565_s14 }
0x1b60   :  { %p4261_p7 = pnand %p4259_p6, %p4256_p5 }
0x1b62   :  { %4264 = shalt.err (!%p4261_p7)
}
0x1b63   :  { %3040 = dma.vmem_to_hbm [thread:$0]  %s3038_s12, 32, %s5565_s14, [#allocation4]   ;;  %v3058_v56 = vld [vmem:[#allocation2] ss:$0 sm:$0xff]  ;;  %v1242_v37 = vpop.xlane.xlu1 %1241  ;;  %vm3029_vm11 = vcmask 1024  }
0x1b64   :  { %v963_v36 = vadd.f32 %v3058_v56, %v962_v24 }
0x1b66   :  { %v1243_v49 = vadd.f32 %v1242_v37, %v963_v36 }
0x1b67   :  { %v2150_v42 = vpop.xlane.xlu1 %2149 }
0x1b68   :  { %v1557_v39 = vadd.f32 %v1556_v26, %v1243_v49 }
0x1b6a   :  { %v1837_v40 = vadd.f32 %v1836_v27, %v1557_v39 }
0x1b6b   :  { %v2744_v46 = vpop.xlane.xlu1 %2743 }
0x1b6c   :  { %v2151_v29 = vadd.f32 %v2150_v42, %v1837_v40 }
0x1b6e   :  { %v2431_v43 = vadd.f32 %v2430_v30, %v2151_v29 }
0x1b70   :  { %v2745_v57 = vadd.f32 %v2744_v46, %v2431_v43 }
0x1b7e   :  { %v3024_v47 = vpop.xlane.xlu1 %3023 }
0x1b7f   :  { %v3025_v38 = vadd.f32 %v3024_v47, %v2745_v57 }
0x1b81   :  { %3030 = vst.msk [vmem:[%s5566_s15] sm:$0x3] %vm3029_vm11, %v3025_v38 }
0x1b82   :  { %4265 = dma.done.wait [#allocation4], 32  }
0x1b83   :  { %4266 = vsyncadd [#allocation4], 4294967264 }
0x1b84   :  { %3048 = vsyncpa [#allocation4], 1 }

</bundles_post_ra>
